<compile_context>
chip_gen: v5e
topology: v5e:2x2
jax: 0.10.0
libtpu: 0.0.40
codegen_flags: <defaults>
</compile_context>

<pallas_src>
import functools

import numpy as np
import jax
import jax.numpy as jnp
from jax.experimental import pallas as pl
from jax.experimental.pallas import tpu as pltpu


# ----------------------------------------------------------------------------
# Pallas kernel: full residual graph-conv block for one flattened batch tile.
# ----------------------------------------------------------------------------
def _res_graph_conv_kernel(hid_dim,
                           x_ref,                    # (bt, N, Cin)
                           blka_ref, da_ref,         # (bt*N, bt*N), (bt*N, 1)
                           w01a_ref, ba_ref,         # (Cin, 2H), (1, H)
                           blkb_ref, db_ref,         # (bt*N, bt*N), (bt*N, 1)
                           w01b_ref, bb_ref,         # (H, 2*Cout), (1, Cout)
                           o_ref):                   # (bt, N, Cout)
    f32 = jnp.float32
    H = hid_dim
    bt, N, Cin = x_ref.shape
    Cout = o_ref.shape[-1]
    M = bt * N

    # Flatten the batch tile into the matmul M dimension (N is a multiple of 8,
    # so this merge is sublane-aligned and free).
    x = x_ref[...].reshape(M, Cin)
    w01a = w01a_ref[...]
    w01b = w01b_ref[...]

    # --- layer 1: SemGraphConv (+ folded BN) + ReLU ---------------------------
    xc = x.astype(w01a.dtype)
    hh = jnp.dot(xc, w01a, preferred_element_type=f32)            # (M, 2H)
    h0 = hh[:, :H]
    h1 = hh[:, H:]
    adj1 = jnp.dot(blka_ref[...], h1.astype(blka_ref.dtype),
                   preferred_element_type=f32)                    # (M, H)
    y1 = da_ref[...] * h0 + adj1 + ba_ref[...]
    y1 = jnp.maximum(y1, 0.0)

    # --- layer 2: SemGraphConv (+ folded BN) + ReLU ---------------------------
    hh2 = jnp.dot(y1.astype(w01b.dtype), w01b, preferred_element_type=f32)
    h0b = hh2[:, :Cout]
    h1b = hh2[:, Cout:]
    adj2 = jnp.dot(blkb_ref[...], h1b.astype(blkb_ref.dtype),
                   preferred_element_type=f32)                    # (M, Cout)
    y2 = db_ref[...] * h0b + adj2 + bb_ref[...]
    y2 = jnp.maximum(y2, 0.0)

    # --- residual --------------------------------------------------------------
    o_ref[...] = (x.astype(f32) + y2).astype(o_ref.dtype).reshape(bt, N, Cout)


def _pick_batch_tile(B, N, requested):
    if requested is not None:
        bt = min(requested, B)
        assert B % bt == 0, "batch must be divisible by batch_tile"
        return bt
    # Cap flattened rows at 512 (block-diag A_off grows quadratically) and keep
    # the grid length >= 2 so v7x can use both TensorCores.
    cap = max(1, 512 // max(N, 1))
    if B >= 2:
        cap = min(cap, B // 2)
    bt = 1
    for d in range(1, B + 1):
        if B % d == 0 and d <= cap:
            bt = d
    return bt


def res_graph_conv_pallas(x, kp, *, batch_tile=None):
    """x: (B, N, C) node features. Returns (B, N, C). Eval-mode semantics."""
    B, N, Cin = x.shape
    H = kp['ba'].shape[1]
    Cout = kp['bb'].shape[1]
    assert Cin == Cout, "residual connection requires input_dim == output_dim"

    bt = _pick_batch_tile(B, N, batch_tile)
    grid = (B // bt,)
    M = bt * N

    # Tile-size-dependent constants (block-diag adjacency, tiled diag vector).
    # These are tiny XLA ops outside the kernel; jit the caller to hoist them.
    def tiled(a_off, d):
        eye = jnp.eye(bt, dtype=a_off.dtype)
        return jnp.kron(eye, a_off), jnp.tile(d, (bt, 1))

    blka, da = tiled(kp['a_off_a'], kp['d_a'])
    blkb, db = tiled(kp['a_off_b'], kp['d_b'])

    weights = (blka, da, kp['w01a'], kp['ba'],
               blkb, db, kp['w01b'], kp['bb'])

    def wspec(arr):
        nd = arr.ndim
        return pl.BlockSpec(arr.shape, lambda i, _nd=nd: (0,) * _nd)

    in_specs = [pl.BlockSpec((bt, N, Cin), lambda i: (i, 0, 0))]
    in_specs += [wspec(a) for a in weights]

    kernel = functools.partial(_res_graph_conv_kernel, H)

    # Advisory cost estimate (useful flops; block-diag zero padding not counted).
    flops = 2 * B * N * (Cin * 2 * H + H * 2 * Cout) + 2 * B * N * N * (H + Cout)
    bytes_accessed = (B * N * (Cin + Cout) * x.dtype.itemsize
                      + (Cin * 2 * H + H * 2 * Cout) * kp['w01a'].dtype.itemsize
                      + 2 * M * M * blka.dtype.itemsize)
    cost = pl.CostEstimate(flops=flops, transcendentals=0,
                           bytes_accessed=bytes_accessed)

    # Only raise the scoped-VMEM limit when the working set actually needs it
    # (v5e default scoped limit is 16 MiB; v7x physical VMEM is only 64 MiB).
    wsz = kp['w01a'].dtype.itemsize
    vmem_est = (2 * 2 * M * max(Cin, Cout) * x.dtype.itemsize      # in/out double-buffered
                + 2 * M * M * wsz                                  # block-diag adjacencies
                + (Cin * 2 * H + H * 2 * Cout) * wsz               # W01 weights
                + 8 * M * max(H, Cout) * 4)                        # f32 intermediates headroom
    vmem_limit = None if vmem_est < (12 << 20) else min(2 * vmem_est, 48 << 20)

    return pl.pallas_call(
        kernel,
        out_shape=jax.ShapeDtypeStruct((B, N, Cout), x.dtype),
        grid=grid,
        in_specs=in_specs,
        out_specs=pl.BlockSpec((bt, N, Cout), lambda i: (i, 0, 0)),
        compiler_params=pltpu.CompilerParams(
            dimension_semantics=("parallel",),
            vmem_limit_bytes=vmem_limit),
        cost_estimate=cost,
    )(x, *weights)


# ----------------------------------------------------------------------------
# Deterministic synthetic parameters (torch layout) + kernel-layout params.
# ----------------------------------------------------------------------------
def make_params(key, adj_mask, in_dim, hid_dim, out_dim):
    n_edges = int(np.count_nonzero(np.asarray(adj_mask)))
    ks = jax.random.split(key, 14)

    def xavier(k, shape):
        fan_in, fan_out = shape[-2], shape[-1]
        limit = 1.414 * np.sqrt(6.0 / (fan_in + fan_out))
        return jax.random.uniform(k, shape, jnp.float32, -limit, limit)

    def gc_params(keys, cin, cout):
        stdv = 1.0 / np.sqrt(cout)
        return {
            'W': xavier(keys[0], (2, cin, cout)),
            # torch inits e = 1; use perturbed values so softmax is non-trivial.
            'e': 1.0 + 0.2 * jax.random.normal(keys[1], (n_edges,), jnp.float32),
            'bias': stdv * jax.random.uniform(keys[2], (cout,), jnp.float32, -1.0, 1.0),
            # BatchNorm1d eval-mode running stats / affine (randomized so the
            # BN fold is actually exercised).
            'bn_gamma': 1.0 + 0.1 * jax.random.normal(keys[3], (cout,), jnp.float32),
            'bn_beta': 0.1 * jax.random.normal(keys[4], (cout,), jnp.float32),
            'bn_mean': 0.1 * jax.random.normal(keys[5], (cout,), jnp.float32),
            'bn_var': 1.0 + 0.1 * jnp.abs(jax.random.normal(keys[6], (cout,), jnp.float32)),
        }

    return {'g1': gc_params(ks[0:7], in_dim, hid_dim),
            'g2': gc_params(ks[7:14], hid_dim, out_dim)}


def derive_kernel_params(p, adj_mask, eps=1e-5, dtype=jnp.float32):
    """Precompute softmax adjacency (diag/off-diag split), fold BN into weights
    (fold in f32, then cast), and concatenate W0|W1 into one wide matmul."""
    adj_np = np.asarray(adj_mask)
    N = adj_np.shape[0]
    idx = np.nonzero(adj_np)                      # row-major, matches torch adj[m] = e
    eye = jnp.eye(N, dtype=jnp.float32)

    def one_layer(pp):
        dense = jnp.full((N, N), -9e15, jnp.float32).at[idx].set(pp['e'].reshape(-1))
        A = jax.nn.softmax(dense, axis=1)
        d = jnp.sum(A * eye, axis=1, keepdims=True)          # (N, 1) diagonal of softmax
        a_off = (A * (1.0 - eye)).astype(dtype)              # off-diagonal part (MXU dtype)
        s = pp['bn_gamma'] / jnp.sqrt(pp['bn_var'] + eps)    # fused BN scale (f32)
        t = pp['bn_beta'] - pp['bn_mean'] * s                # fused BN shift (f32)
        w0 = pp['W'][0] * s[None, :]
        w1 = pp['W'][1] * s[None, :]
        w01 = jnp.concatenate([w0, w1], axis=1).astype(dtype)   # (Cin, 2*Cout)
        b = (pp['bias'] * s + t).reshape(1, -1).astype(jnp.float32)
        return a_off, d.astype(jnp.float32), w01, b

    a_off_a, d_a, w01a, ba = one_layer(p['g1'])
    a_off_b, d_b, w01b, bb = one_layer(p['g2'])
    return dict(a_off_a=a_off_a, d_a=d_a, w01a=w01a, ba=ba,
                a_off_b=a_off_b, d_b=d_b, w01b=w01b, bb=bb)


# ----------------------------------------------------------------------------
# Pure-JAX reference following the PyTorch forward exactly (eval mode).
# ----------------------------------------------------------------------------
def ref_res_graph_conv(x, p, adj_mask, eps=1e-5):
    adj_np = np.asarray(adj_mask)
    N = adj_np.shape[0]
    idx = np.nonzero(adj_np)
    eye = jnp.eye(N, dtype=jnp.float32)

    def sem_gconv(inp, W, e, bias):
        h0 = jnp.matmul(inp, W[0])
        h1 = jnp.matmul(inp, W[1])
        A = jnp.full((N, N), -9e15, jnp.float32).at[idx].set(e.reshape(-1))
        A = jax.nn.softmax(A, axis=1)
        out = jnp.matmul(A * eye, h0) + jnp.matmul(A * (1.0 - eye), h1)
        return out + bias[None, None, :]

    def graph_conv(inp, pp):
        y = sem_gconv(inp, pp['W'], pp['e'], pp['bias'])
        s = pp['bn_gamma'] / jnp.sqrt(pp['bn_var'] + eps)
        t = pp['bn_beta'] - pp['bn_mean'] * s
        y = y * s + t
        # dropout(relu(y)) then relu(y): eval-mode dropout = identity, relu idempotent.
        return jax.nn.relu(y)

    out = graph_conv(x, p['g1'])
    out = graph_conv(out, p['g2'])
    return x + out


if __name__ == "__main__":
    # Lane-dense shapes: 16 graph nodes, 128-dim features, batch 16 so the
    # default tiling gives bt=8 (flattened M=128 rows) and grid=(2,).
    B, N, in_dim, hid_dim, out_dim = 16, 16, 128, 128, 128

    key = jax.random.PRNGKey(0)
    kx, kparam = jax.random.split(key, 2)

    # Deterministic adjacency: self-loops + ring + a few symmetric extra edges.
    rng = np.random.RandomState(0)
    adj = np.zeros((N, N), np.float32)
    for i in range(N):
        adj[i, i] = 1.0
        adj[i, (i + 1) % N] = 1.0
        adj[(i + 1) % N, i] = 1.0
    extra = rng.rand(N, N) < 0.15
    adj = np.maximum(adj, (extra | extra.T).astype(np.float32))

    x = jax.random.normal(kx, (B, N, in_dim), jnp.float32)
    params = make_params(kparam, adj, in_dim, hid_dim, out_dim)
    ref = ref_res_graph_conv(x, params, adj)

    # --- f32 path: exact check against the PyTorch-equivalent reference --------
    kparams = derive_kernel_params(params, adj, dtype=jnp.float32)
    out = jax.block_until_ready(res_graph_conv_pallas(x, kparams))
    np.testing.assert_allclose(np.asarray(out), np.asarray(ref), rtol=1e-4, atol=1e-4)

    # --- bf16 MXU path: sanity check (weights/adjacency bf16, f32 accumulation) -
    kparams_bf16 = derive_kernel_params(params, adj, dtype=jnp.bfloat16)
    out_bf16 = jax.block_until_ready(res_graph_conv_pallas(x, kparams_bf16))
    np.testing.assert_allclose(np.asarray(out_bf16), np.asarray(ref), rtol=0.1, atol=0.3)

    print("KERNEL_OK")
</pallas_src>

<mosaic_0001>
module attributes {stable_mosaic.version = 11 : i64} {
  func.func @_res_graph_conv_kernel(%arg0: i32, %arg1: memref<8x16x128xf32, #tpu.memory_space<vmem>>, %arg2: memref<128x128xf32, #tpu.memory_space<vmem>>, %arg3: memref<128x1xf32, #tpu.memory_space<vmem>>, %arg4: memref<128x256xf32, #tpu.memory_space<vmem>>, %arg5: memref<1x128xf32, #tpu.memory_space<vmem>>, %arg6: memref<128x128xf32, #tpu.memory_space<vmem>>, %arg7: memref<128x1xf32, #tpu.memory_space<vmem>>, %arg8: memref<128x256xf32, #tpu.memory_space<vmem>>, %arg9: memref<1x128xf32, #tpu.memory_space<vmem>>, %arg10: memref<8x16x128xf32, #tpu.memory_space<vmem>>) attributes {dimension_semantics = [#tpu.dimension_semantics<parallel>], iteration_bounds = array<i64: 2>, scalar_prefetch = 0 : i64, scratch_operands = 0 : i64, tpu.core_type = #tpu.core_type<tc>, window_params = [{transform_indices = @transform_0, window_bounds = array<i64: 8, 16, 128>}, {pipeline_mode = #tpu.pipeline_mode<synchronous>, transform_indices = @transform_1, window_bounds = array<i64: 128, 128>}, {pipeline_mode = #tpu.pipeline_mode<synchronous>, transform_indices = @transform_2, window_bounds = array<i64: 128, 1>}, {pipeline_mode = #tpu.pipeline_mode<synchronous>, transform_indices = @transform_3, window_bounds = array<i64: 128, 256>}, {pipeline_mode = #tpu.pipeline_mode<synchronous>, transform_indices = @transform_4, window_bounds = array<i64: 1, 128>}, {pipeline_mode = #tpu.pipeline_mode<synchronous>, transform_indices = @transform_5, window_bounds = array<i64: 128, 128>}, {pipeline_mode = #tpu.pipeline_mode<synchronous>, transform_indices = @transform_6, window_bounds = array<i64: 128, 1>}, {pipeline_mode = #tpu.pipeline_mode<synchronous>, transform_indices = @transform_7, window_bounds = array<i64: 128, 256>}, {pipeline_mode = #tpu.pipeline_mode<synchronous>, transform_indices = @transform_8, window_bounds = array<i64: 1, 128>}, {transform_indices = @transform_9, window_bounds = array<i64: 8, 16, 128>}]} {
    %c0 = arith.constant 0 : index
    %c0_0 = arith.constant 0 : index
    %c0_1 = arith.constant 0 : index
    %0 = vector.load %arg1[%c0, %c0_0, %c0_1] : memref<8x16x128xf32, #tpu.memory_space<vmem>>, vector<8x16x128xf32>
    %1 = vector.shape_cast %0 : vector<8x16x128xf32> to vector<128x128xf32>
    %c0_2 = arith.constant 0 : index
    %c0_3 = arith.constant 0 : index
    %2 = vector.load %arg4[%c0_2, %c0_3] : memref<128x256xf32, #tpu.memory_space<vmem>>, vector<128x256xf32>
    %c0_4 = arith.constant 0 : index
    %c0_5 = arith.constant 0 : index
    %3 = vector.load %arg8[%c0_4, %c0_5] : memref<128x256xf32, #tpu.memory_space<vmem>>, vector<128x256xf32>
    %cst = arith.constant dense<0.000000e+00> : vector<128x256xf32>
    %4 = tpu.matmul %1, %2, %cst {dimension_numbers = #tpu.dot_dimension_numbers<[1], [0], [0], [1], [0, 0, 1, 1], [], []>} : vector<128x128xf32>, vector<128x256xf32>, vector<128x256xf32> -> vector<128x256xf32>
    %5 = vector.extract_strided_slice %4 {offsets = [0, 0], sizes = [128, 128], strides = [1, 1]} : vector<128x256xf32> to vector<128x128xf32>
    %6 = vector.extract_strided_slice %4 {offsets = [0, 128], sizes = [128, 128], strides = [1, 1]} : vector<128x256xf32> to vector<128x128xf32>
    %c0_6 = arith.constant 0 : index
    %c0_7 = arith.constant 0 : index
    %7 = vector.load %arg2[%c0_6, %c0_7] : memref<128x128xf32, #tpu.memory_space<vmem>>, vector<128x128xf32>
    %cst_8 = arith.constant dense<0.000000e+00> : vector<128x128xf32>
    %8 = tpu.matmul %7, %6, %cst_8 {dimension_numbers = #tpu.dot_dimension_numbers<[1], [0], [0], [1], [0, 0, 1, 1], [], []>} : vector<128x128xf32>, vector<128x128xf32>, vector<128x128xf32> -> vector<128x128xf32>
    %c0_9 = arith.constant 0 : index
    %c0_10 = arith.constant 0 : index
    %9 = vector.load %arg3[%c0_9, %c0_10] : memref<128x1xf32, #tpu.memory_space<vmem>>, vector<128x1xf32>
    %10 = vector.broadcast %9 : vector<128x1xf32> to vector<128x128xf32>
    %11 = arith.mulf %10, %5 : vector<128x128xf32>
    %12 = arith.addf %11, %8 : vector<128x128xf32>
    %c0_11 = arith.constant 0 : index
    %c0_12 = arith.constant 0 : index
    %13 = vector.load %arg5[%c0_11, %c0_12] : memref<1x128xf32, #tpu.memory_space<vmem>>, vector<1x128xf32>
    %14 = vector.broadcast %13 : vector<1x128xf32> to vector<128x128xf32>
    %15 = arith.addf %12, %14 : vector<128x128xf32>
    %cst_13 = arith.constant 0.000000e+00 : f32
    %16 = vector.broadcast %cst_13 : f32 to vector<128x128xf32>
    %17 = arith.maximumf %15, %16 : vector<128x128xf32>
    %cst_14 = arith.constant dense<0.000000e+00> : vector<128x256xf32>
    %18 = tpu.matmul %17, %3, %cst_14 {dimension_numbers = #tpu.dot_dimension_numbers<[1], [0], [0], [1], [0, 0, 1, 1], [], []>} : vector<128x128xf32>, vector<128x256xf32>, vector<128x256xf32> -> vector<128x256xf32>
    %19 = vector.extract_strided_slice %18 {offsets = [0, 0], sizes = [128, 128], strides = [1, 1]} : vector<128x256xf32> to vector<128x128xf32>
    %20 = vector.extract_strided_slice %18 {offsets = [0, 128], sizes = [128, 128], strides = [1, 1]} : vector<128x256xf32> to vector<128x128xf32>
    %c0_15 = arith.constant 0 : index
    %c0_16 = arith.constant 0 : index
    %21 = vector.load %arg6[%c0_15, %c0_16] : memref<128x128xf32, #tpu.memory_space<vmem>>, vector<128x128xf32>
    %cst_17 = arith.constant dense<0.000000e+00> : vector<128x128xf32>
    %22 = tpu.matmul %21, %20, %cst_17 {dimension_numbers = #tpu.dot_dimension_numbers<[1], [0], [0], [1], [0, 0, 1, 1], [], []>} : vector<128x128xf32>, vector<128x128xf32>, vector<128x128xf32> -> vector<128x128xf32>
    %c0_18 = arith.constant 0 : index
    %c0_19 = arith.constant 0 : index
    %23 = vector.load %arg7[%c0_18, %c0_19] : memref<128x1xf32, #tpu.memory_space<vmem>>, vector<128x1xf32>
    %24 = vector.broadcast %23 : vector<128x1xf32> to vector<128x128xf32>
    %25 = arith.mulf %24, %19 : vector<128x128xf32>
    %26 = arith.addf %25, %22 : vector<128x128xf32>
    %c0_20 = arith.constant 0 : index
    %c0_21 = arith.constant 0 : index
    %27 = vector.load %arg9[%c0_20, %c0_21] : memref<1x128xf32, #tpu.memory_space<vmem>>, vector<1x128xf32>
    %28 = vector.broadcast %27 : vector<1x128xf32> to vector<128x128xf32>
    %29 = arith.addf %26, %28 : vector<128x128xf32>
    %cst_22 = arith.constant 0.000000e+00 : f32
    %30 = vector.broadcast %cst_22 : f32 to vector<128x128xf32>
    %31 = arith.maximumf %29, %30 : vector<128x128xf32>
    %32 = arith.addf %1, %31 : vector<128x128xf32>
    %33 = vector.shape_cast %32 : vector<128x128xf32> to vector<8x16x128xf32>
    %c0_23 = arith.constant 0 : index
    %c0_24 = arith.constant 0 : index
    %c0_25 = arith.constant 0 : index
    %34 = vector.load %arg10[%c0_23, %c0_24, %c0_25] : memref<8x16x128xf32, #tpu.memory_space<vmem>>, vector<8x16x128xf32>
    tpu.vector_store %arg10[%c0_23, %c0_24, %c0_25], %33 {strides = array<i32>} : memref<8x16x128xf32, #tpu.memory_space<vmem>>, vector<8x16x128xf32>,
    return
  }
  func.func @transform_0(%arg0: i32) -> (i32, i32, i32) {
    %c0_i32 = arith.constant 0 : i32
    %c0_i32_0 = arith.constant 0 : i32
    %c0_i32_1 = arith.constant 0 : i32
    return %arg0, %c0_i32, %c0_i32_0 : i32, i32, i32
  }
  func.func @transform_1(%arg0: i32) -> (i32, i32) {
    %c0_i32 = arith.constant 0 : i32
    %c0_i32_0 = arith.constant 0 : i32
    %c0_i32_1 = arith.constant 0 : i32
    return %c0_i32, %c0_i32_0 : i32, i32
  }
  func.func @transform_2(%arg0: i32) -> (i32, i32) {
    %c0_i32 = arith.constant 0 : i32
    %c0_i32_0 = arith.constant 0 : i32
    %c0_i32_1 = arith.constant 0 : i32
    return %c0_i32, %c0_i32_0 : i32, i32
  }
  func.func @transform_3(%arg0: i32) -> (i32, i32) {
    %c0_i32 = arith.constant 0 : i32
    %c0_i32_0 = arith.constant 0 : i32
    %c0_i32_1 = arith.constant 0 : i32
    return %c0_i32, %c0_i32_0 : i32, i32
  }
  func.func @transform_4(%arg0: i32) -> (i32, i32) {
    %c0_i32 = arith.constant 0 : i32
    %c0_i32_0 = arith.constant 0 : i32
    %c0_i32_1 = arith.constant 0 : i32
    return %c0_i32, %c0_i32_0 : i32, i32
  }
  func.func @transform_5(%arg0: i32) -> (i32, i32) {
    %c0_i32 = arith.constant 0 : i32
    %c0_i32_0 = arith.constant 0 : i32
    %c0_i32_1 = arith.constant 0 : i32
    return %c0_i32, %c0_i32_0 : i32, i32
  }
  func.func @transform_6(%arg0: i32) -> (i32, i32) {
    %c0_i32 = arith.constant 0 : i32
    %c0_i32_0 = arith.constant 0 : i32
    %c0_i32_1 = arith.constant 0 : i32
    return %c0_i32, %c0_i32_0 : i32, i32
  }
  func.func @transform_7(%arg0: i32) -> (i32, i32) {
    %c0_i32 = arith.constant 0 : i32
    %c0_i32_0 = arith.constant 0 : i32
    %c0_i32_1 = arith.constant 0 : i32
    return %c0_i32, %c0_i32_0 : i32, i32
  }
  func.func @transform_8(%arg0: i32) -> (i32, i32) {
    %c0_i32 = arith.constant 0 : i32
    %c0_i32_0 = arith.constant 0 : i32
    %c0_i32_1 = arith.constant 0 : i32
    return %c0_i32, %c0_i32_0 : i32, i32
  }
  func.func @transform_9(%arg0: i32) -> (i32, i32, i32) {
    %c0_i32 = arith.constant 0 : i32
    %c0_i32_0 = arith.constant 0 : i32
    %c0_i32_1 = arith.constant 0 : i32
    return %arg0, %c0_i32, %c0_i32_0 : i32, i32, i32
  }
}

</mosaic_0001>

<bundles_post_ra>
// kernel: tpu_custom_call.1
= control target key start
LH: loop header
LB: loop body
LE: loop exit
PB: predicated region body
PF: predicated region fallthrough
CT: control target
= control target key end

     0   :  { %s2237_s0 = inlined_call_operand.vmem [shape: f32[16,16,128], index: 0, kind: input, shape index: {}]   ;;  %s2238_s1 = inlined_call_operand.hbm [shape: f32[128,128], index: 1, kind: input, shape index: {}]   ;;  %s2239_s2 = inlined_call_operand.vmem [shape: f32[128,1], index: 2, kind: input, shape index: {}]   ;;  %s2240_s3 = inlined_call_operand.hbm [shape: f32[128,256], index: 3, kind: input, shape index: {}]   ;;  %s2241_s4 = inlined_call_operand.vmem [shape: f32[1,128], index: 4, kind: input, shape index: {}]   ;;  %s2242_s5 = inlined_call_operand.hbm [shape: f32[128,128], index: 5, kind: input, shape index: {}]   ;;  %s2243_s6 = inlined_call_operand.vmem [shape: f32[128,1], index: 6, kind: input, shape index: {}]   ;;  %s2244_s7 = inlined_call_operand.hbm [shape: f32[128,256], index: 7, kind: input, shape index: {}]   ;;  %s2245_s8 = inlined_call_operand.vmem [shape: f32[1,128], index: 8, kind: input, shape index: {}]   ;;  %s2246_s9 = inlined_call_operand.hbm [shape: f32[16,16,128], index: 9, kind: output, shape index: {}]  }
   0x1   :  { %2251 = sst [smem:[#allocation19_spill]] %s2238_s1 }
   0x2   :  { %2252 = sst [smem:[#allocation20_spill]] %s2240_s3 }
   0x3   :  { %14 = vsyncpa [#allocation3], 0 }
   0x4   :  { %15 = vsyncpa [#allocation6], 0 }
   0x5   :  { %16 = vsyncpa [#allocation9], 0 }
   0x6   :  { %17 = vsyncpa [#allocation4], 0 }
   0x7   :  { %19 = vsyncpa [#allocation4 + $0x1], 0  ;;  %s1808_s30 = smov 0   ;;  %s1810_s10 = smov 0  }
   0x8   :  { %s1812_s11 = smov 0   ;;  %s1814_s12 = smov 0  }
   0x9 LB: > { %2253 = sst [smem:[#allocation15_spill]] %s1741_s11  ;;  %s1829_s13 = sadd.s32 4294967295, %s1745_s12   ;;  %s1745_s12 = sphi %s1814_s12, %s2264_s12   ;;  %s1741_s11 = sphi %s1812_s11, %s2266_s11   ;;  %s1737_s10 = sphi %s1810_s10, %s2268_s10   ;;  %s1733_s30 = sphi %s1808_s30, %s2267_s30  }
   0xa   : > { %s1386_s14 = sadd.s32 4294967294, %s1745_s12   ;;  %s1833_s15 = sadd.s32 1, %s1745_s12  }
   0xb   : > { %2254 = sst [smem:[#allocation16_spill]] %s1833_s15  ;;  %s226_s16 = sadd.s32 1, %s1741_s11 }
   0xc   : > { %s223_s17 = ssub.s32 %s1745_s12, %s1833_s15  ;;  %p236_p0 = scmp.ne.s32.totalorder %s1741_s11, %s1737_s10 }
   0xd   : > { %p224_p1 = scmp.eq.s32.totalorder %s223_s17, 0  ;;  %p237_p2 = scmp.eq.s32.totalorder %s1829_s13, 1 }
   0xe   : > { %p242_p3 = scmp.ne.s32.totalorder %s1737_s10, %s1733_s30  ;;  %p243_p4 = scmp.eq.s32.totalorder %s1386_s14, 1 }
   0xf   : > { %s1844_s18 = scalar_select %p224_p1, %s1741_s11, %s226_s16  }
  0x10   : > { %p1846_p5 = por %p237_p2, %p236_p0  ;;  %p1850_p6 = por %p243_p4, %p242_p3 }
  0x11   : > { %2255 = sst [smem:[#allocation17_spill]] %s1844_s18  ;;  %p1387_p7 = scmp.ge.s32.totalorder %s1745_s12, 1 }
  0x12   : > { %s2257_s20 = scalar_select %p1850_p6, 1, 0 }
  0x13   : > { %p250_p8 = scmp.lt.s32.totalorder %s1745_s12, 3  ;;  %p1478_p9 = scmp.eq.s32.totalorder %s1829_s13, 0 }
  0x14   : > { %2258 = sst [smem:[#allocation18_spill]] %s2257_s20  ;;  %s1747_s25 = smov [#allocation5]  }
  0x15   : > { %p1857_p10 = pnand %p1387_p7, %p250_p8  ;;  %s2260_s3 = sld [smem:[#allocation20_spill]] }
  0x16   : > { %s280_s26 = sshll.u32 %s1747_s25, 4  ;;  %s2262_s1 = sld [smem:[#allocation19_spill]]  ;;  %s281_s26 = int_to_ptr.vmem [resolvable:$true] %s280_s26 }
  0x17   : > { %p1461_p11 = pneg %p1857_p10  ;;  %s1748_s16 = smov 256  }
  0x18   : > { %s1749_s17 = smov 16   ;;  %s1750_s22 = smov [#allocation2]  }
  0x19   : > { %p1868_p12 = pnand %p1478_p9, %p1461_p11  ;;  %s263_s23 = sshll.u32 %s1750_s22, 4  ;;  %s264_s23 = int_to_ptr.vmem [resolvable:$true] %s263_s23 }
  0x1a   : > { %s1751_s25 = smov 128   ;;  %s295_s28 = sshll.u32 %s2242_s5, 4  ;;  %s296_s28 = int_to_ptr.hbm [resolvable:$true] %s295_s28 }
  0x1b   : > { %s278_s24 = sshll.u32 %s2260_s3, 4  ;;  %s1752_s3 = smov 8   ;;  %s279_s24 = int_to_ptr.hbm [resolvable:$true] %s278_s24 }
  0x1c   : > { %s261_s14 = sshll.u32 %s2262_s1, 4  ;;  %s1753_s29 = smov [#allocation7]   ;;  %s262_s14 = int_to_ptr.hbm [resolvable:$true] %s261_s14 }
  0x1d   : > { %1467 = dma.hbm_to_vmem [thread:$0]  (!%p1868_p12), %s279_s24, 4096, %s281_s26, [#allocation6], %s1748_s16, %s1748_s16, %s1749_s17  }
  0x1e   : > { %1464 = dma.hbm_to_vmem [thread:$0]  (!%p1868_p12), %s262_s14, 2048, %s264_s23, [#allocation3], %s1751_s25, %s1751_s25, %s1752_s3  }
  0x1f   : > { %s297_s1 = sshll.u32 %s1753_s29, 4  ;;  %s312_s24 = sshll.u32 %s2244_s7, 4  ;;  %s298_s1 = int_to_ptr.vmem [resolvable:$true] %s297_s1  ;;  %s313_s24 = int_to_ptr.hbm [resolvable:$true] %s312_s24 }
  0x20   : > { %1470 = dma.hbm_to_vmem [thread:$0]  (!%p1868_p12), %s296_s28, 2048, %s298_s1, [#allocation6], %s1751_s25, %s1751_s25, %s1752_s3  }
  0x21   : > { %s1754_s26 = smov [#allocation8]   ;;  %343 = sbr.rel (%p1857_p10) target bundleno = 967 (0x3c7), region = 56 }
  0x22   : > { %s314_s22 = sshll.u32 %s1754_s26, 4  ;;  %s315_s22 = int_to_ptr.vmem [resolvable:$true] %s314_s22 }
  0x23   : > { %1473 = dma.hbm_to_vmem [thread:$0]  (!%p1868_p12), %s313_s24, 4096, %s315_s22, [#allocation9], %s1748_s16, %s1748_s16, %s1749_s17  }
  0x26   : > { %1716 = dma.done.wait (%p1478_p9), [#allocation3], 2048  }
  0x27   : > { %1718 = vsyncadd (%p1478_p9), [#allocation3], 4294965248 }
  0x28   : > { %1720 = dma.done.wait (%p1478_p9), [#allocation6], 6144  }
  0x29   : > { %1722 = vsyncadd (%p1478_p9), [#allocation6], 4294961152 }
  0x2a   : > { %1724 = dma.done.wait (%p1478_p9), [#allocation9], 4096  }
  0x2b   : > { %1726 = vsyncadd (%p1478_p9), [#allocation9], 4294963200  ;;  %v451_v0 = vld [vmem:[#allocation5 + $0xf8] sm:$0xff]  ;;  %v449_v1 = vld [vmem:[#allocation5 + $0xe8] sm:$0xff]  ;;  %s1399_s1 = sshll.u32 %s1829_s13, 3  ;;  %v1755_v46 = vmov 0  }
  0x2c   : > { %1427 = vmatpush.msra.mxu3 %v451_v0  ;;  %549 = vmatpush.msra.mxu1 %v451_v0  ;;  %v447_v2 = vld [vmem:[#allocation5 + $0xd8] sm:$0xff]  ;;  %v445_v3 = vld [vmem:[#allocation5 + $0xc8] sm:$0xff]  ;;  %p397_p13 = scmp.lt.s32.totalorder %s1399_s1, 15  ;;  %v450_v24 = vld [vmem:[#allocation5 + $0xf0] sm:$0xff]  ;;  %s393_s20 = sand.u32 1, %s1737_s10  }
  0x2d   : > { %v443_v4 = vld [vmem:[#allocation5 + $0xb8] sm:$0xff]  ;;  %v441_v5 = vld [vmem:[#allocation5 + $0xa8] sm:$0xff]  ;;  %v448_v25 = vld [vmem:[#allocation5 + $0xe0] sm:$0xff]  ;;  %1411 = vmatpush.msra.mxu2 %v450_v24  ;;  %484 = vmatpush.msra.mxu0 %v450_v24  ;;  %s1398_s21 = sshll.u32 %s393_s20, 7  ;;  %s1410_s14 = sshll.u32 %s1829_s13, 7 }
  0x2e   : > { %1428 = vmatpush.msra.mxu3 %v449_v1  ;;  %550 = vmatpush.msra.mxu1 %v449_v1  ;;  %v439_v6 = vld [vmem:[#allocation5 + $0x98] sm:$0xff]  ;;  %v437_v7 = vld [vmem:[#allocation5 + $0x88] sm:$0xff]  ;;  %s2270_s1 = smov (!%p397_p13, %s1399_s1), 15  ;;  %v446_v26 = vld [vmem:[#allocation5 + $0xd0] sm:$0xff]  ;;  %s2155_s27 = scalar_lea.vmem [#allocation10], %s1398_s21 }
  0x2f   : > { %v435_v8 = vld [vmem:[#allocation5 + $0x78] sm:$0xff]  ;;  %v433_v9 = vld [vmem:[#allocation5 + $0x68] sm:$0xff]  ;;  %s1408_s3 = sshll.u32 %s2270_s1, 4  ;;  %1412 = vmatpush.msra.mxu2 %v448_v25  ;;  %485 = vmatpush.msra.mxu0 %v448_v25  ;;  %v444_v29 = vld [vmem:[#allocation5 + $0xc0] sm:$0xff]  ;;  %s1279_s23 = scalar_lea.hbm %s2246_s9, %s1410_s14 }
  0x30   : > { %1429 = vmatpush.msra.mxu3 %v447_v2  ;;  %551 = vmatpush.msra.mxu1 %v447_v2  ;;  %v431_v10 = vld [vmem:[#allocation5 + $0x58] sm:$0xff]  ;;  %v429_v11 = vld [vmem:[#allocation5 + $0x48] sm:$0xff]  ;;  %s1907_s18 = scalar_lea.vmem %s2237_s0, %s1408_s3  ;;  %v442_v36 = vld [vmem:[#allocation5 + $0xb0] sm:$0xff]  ;;  %s1280_s25 = sshll.u32 %s2155_s27, 4  ;;  %s1281_s25 = int_to_ptr.vmem [resolvable:$true] %s1280_s25 }
  0x31   : > { %v427_v12 = vld [vmem:[#allocation5 + $0x38] sm:$0xff]  ;;  %v425_v13 = vld [vmem:[#allocation5 + $0x28] sm:$0xff]  ;;  %v1910_v16 = vld [vmem:[%s1907_s18 + $0x40] sm:$0xff]  ;;  %1413 = vmatpush.msra.mxu2 %v446_v26  ;;  %486 = vmatpush.msra.mxu0 %v446_v26  ;;  %s1282_s28 = sshll.u32 %s1279_s23, 4  ;;  %s1267_s13 = scalar_lea.sflag [#allocation4], %s393_s20  ;;  %s1283_s28 = int_to_ptr.hbm [resolvable:$true] %s1282_s28 }
  0x32   : > { %1430 = vmatpush.msra.mxu3 %v445_v3  ;;  %552 = vmatpush.msra.mxu1 %v445_v3  ;;  %v423_v14 = vld [vmem:[#allocation5 + $0x18] sm:$0xff]  ;;  %v421_v15 = vld [vmem:[#allocation5 + $0x8] sm:$0xff]  ;;  %v1913_v17 = vld [vmem:[%s1907_s18] sm:$0xff]  ;;  %s1685_s29 = sshra.s32 %s1283_s28, 4  ;;  %s1691_s1 = scalar_lea.hbm %s2246_s9, 256  ;;  %s1686_s29 = int_to_ptr.hbm [resolvable:$true] %s1685_s29 }
  0x33   : > { %v1918_v18 = vld [vmem:[%s1907_s18 + $0x48] sm:$0xff]  ;;  %v1926_v20 = vld [vmem:[%s1907_s18 + $0x50] sm:$0xff]  ;;  %v1934_v22 = vld [vmem:[%s1907_s18 + $0x58] sm:$0xff]  ;;  %1414 = vmatpush.msra.mxu2 %v444_v29  ;;  %487 = vmatpush.msra.mxu0 %v444_v29  ;;  %s1687_s24 = scalar_lea.hbm %s1686_s29, 128  ;;  %p1692_p3 = scmp.lt.s32.totalorder %s1686_s29, %s2246_s9 }
  0x34   : > { %1431 = vmatpush.msra.mxu3 %v443_v4  ;;  %553 = vmatpush.msra.mxu1 %v443_v4  ;;  %v1921_v19 = vld [vmem:[%s1907_s18 + $0x8] sm:$0xff]  ;;  %v1929_v21 = vld [vmem:[%s1907_s18 + $0x10] sm:$0xff]  ;;  %v1937_v23 = vld [vmem:[%s1907_s18 + $0x18] sm:$0xff]  ;;  %p1688_p0 = scmp.ne.s32.totalorder %s1686_s29, %s1687_s24  ;;  %p1693_p4 = scmp.lt.s32.totalorder %s1691_s1, %s1687_s24 }
  0x35   : > { %v1942_v27 = vld [vmem:[%s1907_s18 + $0x60] sm:$0xff]  ;;  %v1950_v30 = vld [vmem:[%s1907_s18 + $0x68] sm:$0xff]  ;;  %v1958_v32 = vld [vmem:[%s1907_s18 + $0x70] sm:$0xff]  ;;  %1415 = vmatpush.msra.mxu2 %v442_v36  ;;  %488 = vmatpush.msra.mxu0 %v442_v36 }
  0x36   : > { %1432 = vmatpush.msra.mxu3 %v441_v5  ;;  %554 = vmatpush.msra.mxu1 %v441_v5  ;;  %v1945_v28 = vld [vmem:[%s1907_s18 + $0x20] sm:$0xff]  ;;  %v1953_v31 = vld [vmem:[%s1907_s18 + $0x28] sm:$0xff]  ;;  %v1961_v33 = vld [vmem:[%s1907_s18 + $0x30] sm:$0xff]  ;;  %p1689_p1 = pnand %p1688_p0, %p1846_p5  ;;  %p1694_p7 = por %p1693_p4, %p1692_p3 }
  0x37   : > { %v1966_v34 = vld [vmem:[%s1907_s18 + $0x78] sm:$0xff]  ;;  %v440_v37 = vld [vmem:[#allocation5 + $0xa0] sm:$0xff]  ;;  %v438_v38 = vld [vmem:[#allocation5 + $0x90] sm:$0xff]  ;;  %1530 = vset.pattern.permute.xlu0 %v1755_v46  ;;  %1531 = vset.pattern.permute.xlu1 %v1755_v46 }
  0x38   : > { %1433 = vmatpush.msra.mxu3 %v439_v6  ;;  %555 = vmatpush.msra.mxu1 %v439_v6  ;;  %v1969_v35 = vld [vmem:[%s1907_s18 + $0x38] sm:$0xff]  ;;  %v436_v39 = vld [vmem:[#allocation5 + $0x80] sm:$0xff]  ;;  %v434_v40 = vld [vmem:[#allocation5 + $0x70] sm:$0xff]  ;;  %p1690_p2 = pneg %p1689_p1 }
  0x39   : > { %1416 = vmatpush.msra.mxu2 %v440_v37  ;;  %489 = vmatpush.msra.mxu0 %v440_v37  ;;  %v432_v41 = vld [vmem:[#allocation5 + $0x60] sm:$0xff]  ;;  %v430_v42 = vld [vmem:[#allocation5 + $0x50] sm:$0xff]  ;;  %v696_v50 = vld [vmem:[%s2239_s2 + $0x8] sm:$0xff] }
  0x3a   : > { %1434 = vmatpush.msra.mxu3 %v437_v7  ;;  %556 = vmatpush.msra.mxu1 %v437_v7  ;;  %v428_v43 = vld [vmem:[#allocation5 + $0x40] sm:$0xff]  ;;  %v426_v44 = vld [vmem:[#allocation5 + $0x30] sm:$0xff]  ;;  %v698_v56 = vld [vmem:[%s2239_s2 + $0x18] sm:$0xff]  ;;  %p1695_p8 = pnand %p1694_p7, %p1690_p2 }
  0x3b   : > { %1417 = vmatpush.msra.mxu2 %v438_v38  ;;  %490 = vmatpush.msra.mxu0 %v438_v38  ;;  %v424_v45 = vld [vmem:[#allocation5 + $0x20] sm:$0xff]  ;;  %v422_v48 = vld [vmem:[#allocation5 + $0x10] sm:$0xff]  ;;  %v704_v57 = vld [vmem:[%s2239_s2 + $0x48] sm:$0xff] }
  0x3c   : > { %1435 = vmatpush.msra.mxu3 %v435_v8  ;;  %557 = vmatpush.msra.mxu1 %v435_v8  ;;  %v695_v47 = vld [vmem:[%s2239_s2] sm:$0xff]  ;;  %v697_v53 = vld [vmem:[%s2239_s2 + $0x10] sm:$0xff]  ;;  %v702_v61 = vld [vmem:[%s2239_s2 + $0x38] sm:$0xff] }
  0x3d   : > { %1418 = vmatpush.msra.mxu2 %v436_v39  ;;  %491 = vmatpush.msra.mxu0 %v436_v39  ;;  %v420_v49 = vld [vmem:[#allocation5] sm:$0xff]  ;;  %v701_v54 = vld [vmem:[%s2239_s2 + $0x30] sm:$0xff]  ;;  %v700_v1 = vld [vmem:[%s2239_s2 + $0x28] sm:$0xff] }
  0x3e   : > { %1436 = vmatpush.msra.mxu3 %v433_v9  ;;  %558 = vmatpush.msra.mxu1 %v433_v9  ;;  %v699_v60 = vld [vmem:[%s2239_s2 + $0x20] sm:$0xff]  ;;  %v705_v2 = vld [vmem:[%s2239_s2 + $0x50] sm:$0xff]  ;;  %v710_v3 = vld [vmem:[%s2239_s2 + $0x78] sm:$0xff] }
  0x3f   : > { %1419 = vmatpush.msra.mxu2 %v434_v40  ;;  %492 = vmatpush.msra.mxu0 %v434_v40  ;;  %v707_v62 = vld [vmem:[%s2239_s2 + $0x60] sm:$0xff]  ;;  %v708_v7 = vld [vmem:[%s2239_s2 + $0x68] sm:$0xff]  ;;  %v1072_v8 = vld [vmem:[%s2243_s6 + $0x10] sm:$0xff] }
  0x40   : > { %1437 = vmatpush.msra.mxu3 %v431_v10  ;;  %559 = vmatpush.msra.mxu1 %v431_v10  ;;  %v703_v5 = vld [vmem:[%s2239_s2 + $0x40] sm:$0xff]  ;;  %v709_v26 = vld [vmem:[%s2239_s2 + $0x70] sm:$0xff]  ;;  %v1071_v29 = vld [vmem:[%s2243_s6 + $0x8] sm:$0xff] }
  0x41   : > { %1420 = vmatpush.msra.mxu2 %v432_v41  ;;  %493 = vmatpush.msra.mxu0 %v432_v41  ;;  %v1082_v25 = vld [vmem:[%s2243_s6 + $0x60] sm:$0xff]  ;;  %v1083_v37 = vld [vmem:[%s2243_s6 + $0x68] sm:$0xff]  ;;  %v620_v39 = vld [vmem:[#allocation2 + $0x30] sm:$0xff] }
  0x42   : > { %1438 = vmatpush.msra.mxu3 %v429_v11  ;;  %560 = vmatpush.msra.mxu1 %v429_v11  ;;  %v1070_v11 = vld [vmem:[%s2243_s6] sm:$0xff]  ;;  %v619_v38 = vld [vmem:[#allocation2 + $0x28] sm:$0xff]  ;;  %v621_v41 = vld [vmem:[#allocation2 + $0x38] sm:$0xff] }
  0x43   : > { %1421 = vmatpush.msra.mxu2 %v430_v42  ;;  %494 = vmatpush.msra.mxu0 %v430_v42  ;;  %v618_v36 = vld [vmem:[#allocation2 + $0x20] sm:$0xff] }
  0x44   : > { %1439 = vmatpush.msra.mxu3 %v427_v12  ;;  %561 = vmatpush.msra.mxu1 %v427_v12  ;;  %v1075_v12 = vld [vmem:[%s2243_s6 + $0x28] sm:$0xff]  ;;  %v622_v42 = vld [vmem:[#allocation2 + $0x40] sm:$0xff] }
  0x45   : > { %1422 = vmatpush.msra.mxu2 %v428_v43  ;;  %495 = vmatpush.msra.mxu0 %v428_v43 }
  0x46   : > { %1440 = vmatpush.msra.mxu3 %v425_v13  ;;  %562 = vmatpush.msra.mxu1 %v425_v13 }
  0x47   : > { %1423 = vmatpush.msra.mxu2 %v426_v44  ;;  %713 = vperm.xlu0 %1530, %v695_v47   ;;  %v483_v47 = vld [vmem:[#allocation8 + $0xf8] sm:$0xff] }
  0x48   : > { %1441 = vmatpush.msra.mxu3 %v423_v14  ;;  %563 = vmatpush.msra.mxu1 %v423_v14 }
  0x49   : > { %1424 = vmatpush.msra.mxu2 %v424_v45  ;;  %496 = vmatpush.msra.mxu0 %v426_v44  ;;  %v623_v44 = vld [vmem:[#allocation2 + $0x48] sm:$0xff] }
  0x4a   : > { %1442 = vmatpush.msra.mxu3 %v421_v15  ;;  %564 = vmatpush.msra.mxu1 %v421_v15  ;;  %v1073_v15 = vld [vmem:[%s2243_s6 + $0x18] sm:$0xff] }
  0x4b   : > { %589 = vmatmul.f32.vlgmr.msra.gmra.mxu3 %v1910_v16  ;;  %565 = vmatmul.f32.vlgmr.msra.gmra.mxu1 %v1913_v17 }
  0x4c   : > { %1532 = vset.pattern.permute.xlu2 %v1755_v46  ;;  %1425 = vmatpush.msra.mxu2 %v422_v48  ;;  %v482_v46 = vld [vmem:[#allocation8 + $0xf0] sm:$0xff] }
  0x4d   : > { %497 = vmatpush.msra.mxu0 %v424_v45  ;;  %723 = vperm.xlu1 %1531, %v697_v53   ;;  %v476_v53 = vld [vmem:[#allocation8 + $0xc0] sm:$0xff] }
  0x4e   : > { %1426 = vmatpush.msra.mxu2 %v420_v49  ;;  %733 = vperm.xlu2 %1532, %v699_v60   ;;  %v470_v60 = vld [vmem:[#allocation8 + $0x90] sm:$0xff] }
  0x4f   : > { %498 = vmatpush.msra.mxu0 %v422_v48  ;;  %524 = vmatmul.f32.vlgmr.msra.gmra.mxu2 %v1910_v16  ;;  %v1078_v16 = vld [vmem:[%s2243_s6 + $0x40] sm:$0xff] }
  0x50   : > { %718 = vperm.xlu0 %1530, %v696_v50   ;;  %v480_v48 = vld [vmem:[#allocation8 + $0xe0] sm:$0xff]  ;;  %859 = vmatpush.msrb.mxu3 %v482_v46  ;;  %v478_v50 = vld [vmem:[#allocation8 + $0xd0] sm:$0xff] }
  0x51   : > { %499 = vmatpush.msra.mxu0 %v420_v49  ;;  %v481_v49 = vld [vmem:[#allocation8 + $0xe8] sm:$0xff] }
  0x52   : > { %500 = vmatmul.f32.vlgmr.msra.gmra.mxu0 %v1913_v17  ;;  %860 = vmatpush.msrb.mxu3 %v480_v48 }
  0x53   : > { %592 = vmatmul.f32.gmra.mxu3 %v1918_v18  ;;  %568 = vmatmul.f32.gmra.mxu1 %v1921_v19 }
  0x54   : > { %924 = vmatpush.msrb.mxu0 %v483_v47  ;;  %861 = vmatpush.msrb.mxu3 %v478_v50 }
  0x55   : > { %728 = vperm.xlu1 %1531, %v698_v56  }
  0x56   : > { %738 = vperm.xlu2 %1532, %v700_v1   ;;  %925 = vmatpush.msrb.mxu0 %v481_v49  ;;  %v466_v1 = vld [vmem:[#allocation8 + $0x70] sm:$0xff] }
  0x57   : > { %527 = vmatmul.f32.gmra.mxu2 %v1918_v18  ;;  %v706_v18 = vld [vmem:[%s2239_s2 + $0x58] sm:$0xff]  ;;  %862 = vmatpush.msrb.mxu3 %v476_v53 }
  0x58   : > { %743 = vperm.xlu0 %1530, %v701_v54   ;;  %v477_v54 = vld [vmem:[#allocation8 + $0xc8] sm:$0xff] }
  0x5a   : > { %503 = vmatmul.f32.gmra.mxu0 %v1921_v19  ;;  %v1076_v19 = vld [vmem:[%s2243_s6 + $0x30] sm:$0xff] }
  0x5b   : > { %595 = vmatmul.f32.gmra.mxu3 %v1926_v20  ;;  %571 = vmatmul.f32.gmra.mxu1 %v1929_v21 }
  0x5d   : > { %748 = vperm.xlu1 %1531, %v702_v61   ;;  %v471_v61 = vld [vmem:[#allocation8 + $0x98] sm:$0xff] }
  0x5e   : > { %753 = vperm.xlu2 %1532, %v703_v5  }
  0x5f   : > { %530 = vmatmul.f32.gmra.mxu2 %v1926_v20  ;;  %v1081_v20 = vld [vmem:[%s2243_s6 + $0x58] sm:$0xff] }
  0x60   : > { %758 = vperm.xlu0 %1530, %v704_v57   ;;  %v475_v57 = vld [vmem:[#allocation8 + $0xb8] sm:$0xff] }
  0x62   : > { %506 = vmatmul.f32.gmra.mxu0 %v1929_v21 }
  0x63   : > { %598 = vmatmul.f32.gmra.mxu3 %v1934_v22  ;;  %574 = vmatmul.f32.gmra.mxu1 %v1937_v23 }
  0x65   : > { %763 = vperm.xlu1 %1531, %v705_v2   ;;  %v467_v2 = vld [vmem:[#allocation8 + $0x78] sm:$0xff] }
  0x66   : > { %768 = vperm.xlu2 %1532, %v706_v18   ;;  %v455_v18 = vld [vmem:[#allocation8 + $0x18] sm:$0xff] }
  0x67   : > { %533 = vmatmul.f32.gmra.mxu2 %v1934_v22  ;;  %v1079_v22 = vld [vmem:[%s2243_s6 + $0x48] sm:$0xff] }
  0x68   : > { %773 = vperm.xlu0 %1530, %v707_v62   ;;  %v625_v62 = vld [vmem:[#allocation2 + $0x58] sm:$0xff] }
  0x6a   : > { %509 = vmatmul.f32.gmra.mxu0 %v1937_v23  ;;  %v1084_v23 = vld [vmem:[%s2243_s6 + $0x70] sm:$0xff] }
  0x6b   : > { %601 = vmatmul.f32.gmra.mxu3 %v1942_v27  ;;  %577 = vmatmul.f32.gmra.mxu1 %v1945_v28 }
  0x6d   : > { %778 = vperm.xlu1 %1531, %v708_v7   ;;  %v463_v7 = vld [vmem:[#allocation8 + $0x58] sm:$0xff] }
  0x6e   : > { %783 = vperm.xlu2 %1532, %v709_v26  }
  0x6f   : > { %536 = vmatmul.f32.gmra.mxu2 %v1942_v27  ;;  %v1085_v27 = vld [vmem:[%s2243_s6 + $0x78] sm:$0xff] }
  0x70   : > { %788 = vperm.xlu0 %1530, %v710_v3   ;;  %v464_v3 = vld [vmem:[#allocation8 + $0x60] sm:$0xff] }
  0x72   : > { %512 = vmatmul.f32.gmra.mxu0 %v1945_v28  ;;  %v614_v28 = vld [vmem:[#allocation2] sm:$0xff] }
  0x73   : > { %604 = vmatmul.f32.gmra.mxu3 %v1950_v30  ;;  %580 = vmatmul.f32.gmra.mxu1 %v1953_v31 }
  0x75   : > { %1088 = vperm.xlu1 %1531, %v1070_v11   ;;  %v458_v11 = vld [vmem:[#allocation8 + $0x30] sm:$0xff] }
  0x76   : > { %1093 = vperm.xlu2 %1532, %v1071_v29   ;;  %v2119_v29 = vld [vmem:[%s2241_s4] ss:$0 sm:$0xff] }
  0x77   : > { %539 = vmatmul.f32.gmra.mxu2 %v1950_v30  ;;  %v615_v30 = vld [vmem:[#allocation2 + $0x8] sm:$0xff] }
  0x78   : > { %1098 = vperm.xlu0 %1530, %v1072_v8   ;;  %v626_v8 = vld [vmem:[#allocation2 + $0x60] sm:$0xff] }
  0x7a   : > { %515 = vmatmul.f32.gmra.mxu0 %v1953_v31  ;;  %v1074_v31 = vld [vmem:[%s2243_s6 + $0x20] sm:$0xff] }
  0x7b   : > { %607 = vmatmul.f32.gmra.mxu3 %v1958_v32  ;;  %583 = vmatmul.f32.gmra.mxu1 %v1961_v33 }
  0x7d   : > { %1103 = vperm.xlu1 %1531, %v1073_v15   ;;  %v627_v15 = vld [vmem:[#allocation2 + $0x68] sm:$0xff] }
  0x7e   : > { %1108 = vperm.xlu2 %1532, %v1074_v31  }
  0x7f   : > { %542 = vmatmul.f32.gmra.mxu2 %v1958_v32  ;;  %v616_v32 = vld [vmem:[#allocation2 + $0x10] sm:$0xff] }
  0x80   : > { %1113 = vperm.xlu0 %1530, %v1075_v12   ;;  %v459_v12 = vld [vmem:[#allocation8 + $0x38] sm:$0xff] }
  0x82   : > { %518 = vmatmul.f32.gmra.mxu0 %v1961_v33  ;;  %v1077_v33 = vld [vmem:[%s2243_s6 + $0x38] sm:$0xff] }
  0x83   : > { %610 = vmatmul.f32.gmra.mxu3 %v1966_v34  ;;  %586 = vmatmul.f32.gmra.mxu1 %v1969_v35 }
  0x85   : > { %1118 = vperm.xlu1 %1531, %v1076_v19   ;;  %v452_v19 = vld [vmem:[#allocation8] sm:$0xff] }
  0x86   : > { %1123 = vperm.xlu2 %1532, %v1077_v33  }
  0x87   : > { %545 = vmatmul.f32.gmra.mxu2 %v1966_v34  ;;  %v617_v34 = vld [vmem:[#allocation2 + $0x18] sm:$0xff] }
  0x88   : > { %1128 = vperm.xlu0 %1530, %v1078_v16  }
  0x8a   : > { %521 = vmatmul.f32.gmra.mxu0 %v1969_v35  ;;  %v1080_v35 = vld [vmem:[%s2243_s6 + $0x50] sm:$0xff] }
  0x8d   : > { %1133 = vperm.xlu1 %1531, %v1079_v22  }
  0x8e   : > { %1138 = vperm.xlu2 %1532, %v1080_v35  }
  0x90   : > { %1143 = vperm.xlu0 %1530, %v1081_v20   ;;  %v453_v20 = vld [vmem:[#allocation8 + $0x8] sm:$0xff] }
  0x95   : > { %1148 = vperm.xlu1 %1531, %v1082_v25  }
  0x96   : > { %1153 = vperm.xlu2 %1532, %v1083_v37  }
  0x98   : > { %1158 = vperm.xlu0 %1530, %v1084_v23  }
  0x9d   : > { %1163 = vperm.xlu1 %1531, %v1085_v27  }
  0xb9   : > { %v714_v27 = vpop.permute.xlu0 %713 }
  0xc2   : > { %v719_v35 = vpop.permute.xlu0 %718 }
  0xc8   : > { %v1983_v52 = vpop.f32.mrf.mxu1 }
  0xce   : > { %v1981_v51 = vpop.f32.mrf.mxu3 }
  0xcf   : > { %v501_v23 = vpop.f32.mrf.mxu0 }
  0xd0   : > { %v2002_v58 = vpop.f32.mrf.mxu1 }
  0xd2   : > { %v2100_v40 = vpop.f32.mrf.mxu2 }
  0xd6   : > { %v1993_v55 = vpop.f32.mrf.mxu3 }
  0xd7   : > { %v504_v26 = vpop.f32.mrf.mxu0 }
  0xd8   : > { %v2016_v63 = vpop.f32.mrf.mxu1 }
  0xda   : > { %v2102_v43 = vpop.f32.mrf.mxu2 }
  0xde   : > { %v596_v59 = vpop.f32.mrf.mxu3 }
  0xdf   : > { %v507_v33 = vpop.f32.mrf.mxu0 }
  0xe0   : > { %v575_v4 = vpop.f32.mrf.mxu1 }
  0xe2   : > { %v2104_v45 = vpop.f32.mrf.mxu2 }
  0xe6   : > { %v599_v0 = vpop.f32.mrf.mxu3 }
  0xe7   : > { %v510_v46 = vpop.f32.mrf.mxu0 }
  0xe8   : > { %v578_v10 = vpop.f32.mrf.mxu1 }
  0xea   : > { %v2106_v56 = vpop.f32.mrf.mxu2 }
  0xee   : > { %v602_v6 = vpop.f32.mrf.mxu3 }
  0xef   : > { %v513_v53 = vpop.f32.mrf.mxu0 }
  0xf0   : > { %v581_v14 = vpop.f32.mrf.mxu1 }
  0xf2   : > { %v2108_v5 = vpop.f32.mrf.mxu2 }
  0xf6   : > { %v605_v9 = vpop.f32.mrf.mxu3 }
  0xf8   : > { %v584_v21 = vpop.f32.mrf.mxu1 }
  0xfa   : > { %v2110_v16 = vpop.f32.mrf.mxu2 }
  0xfe   : > { %v608_v13 = vpop.f32.mrf.mxu3 }
 0x100   : > { %v587_v24 = vpop.f32.mrf.mxu1 }
 0x102   : > { %v2112_v22 = vpop.f32.mrf.mxu2 }
 0x106   : > { %v611_v17 = vpop.f32.mrf.mxu3 }
 0x107   : > { %630 = vmatpush.msrb.mxu2 %v611_v17  ;;  %v454_v17 = vld [vmem:[#allocation8 + $0x10] sm:$0xff] }
 0x109   : > { %631 = vmatpush.msrb.mxu2 %v608_v13  ;;  %v456_v13 = vld [vmem:[#allocation8 + $0x20] sm:$0xff] }
 0x10a   : > { %v2114_v25 = vpop.f32.mrf.mxu2 }
 0x10b   : > { %632 = vmatpush.msrb.mxu2 %v605_v9  ;;  %v460_v9 = vld [vmem:[#allocation8 + $0x40] sm:$0xff] }
 0x10d   : > { %633 = vmatpush.msrb.mxu2 %v602_v6  ;;  %v462_v6 = vld [vmem:[#allocation8 + $0x50] sm:$0xff] }
 0x10f   : > { %634 = vmatpush.msrb.mxu2 %v599_v0  ;;  %v469_v0 = vld [vmem:[#allocation8 + $0x88] sm:$0xff] }
 0x111   : > { %635 = vmatpush.msrb.mxu2 %v596_v59  ;;  %v473_v59 = vld [vmem:[#allocation8 + $0xa8] sm:$0xff] }
 0x113   : > { %636 = vmatpush.msrb.mxu2 %v1993_v55  ;;  %v474_v55 = vld [vmem:[#allocation8 + $0xb0] sm:$0xff] }
 0x114   : > { %863 = vmatpush.msrb.mxu3 %v474_v55 }
 0x115   : > { %637 = vmatpush.msrb.mxu2 %v1981_v51  ;;  %v479_v51 = vld [vmem:[#allocation8 + $0xd8] sm:$0xff] }
 0x116   : > { %926 = vmatpush.msrb.mxu0 %v479_v51 }
 0x117   : > { %638 = vmatpush.msrb.mxu2 %v587_v24  ;;  %v629_v24 = vld [vmem:[#allocation2 + $0x78] sm:$0xff] }
 0x118   : > { %927 = vmatpush.msrb.mxu0 %v477_v54 }
 0x119   : > { %639 = vmatpush.msrb.mxu2 %v584_v21  ;;  %v628_v21 = vld [vmem:[#allocation2 + $0x70] sm:$0xff] }
 0x11a   : > { %928 = vmatpush.msrb.mxu0 %v475_v57 }
 0x11b   : > { %640 = vmatpush.msrb.mxu2 %v581_v14  ;;  %v457_v14 = vld [vmem:[#allocation8 + $0x28] sm:$0xff] }
 0x11c   : > { %929 = vmatpush.msrb.mxu0 %v473_v59 }
 0x11d   : > { %641 = vmatpush.msrb.mxu2 %v578_v10  ;;  %v461_v10 = vld [vmem:[#allocation8 + $0x48] sm:$0xff] }
 0x11e   : > { %930 = vmatpush.msrb.mxu0 %v471_v61 }
 0x11f   : > { %642 = vmatpush.msrb.mxu2 %v575_v4  ;;  %v465_v4 = vld [vmem:[#allocation8 + $0x68] sm:$0xff] }
 0x120   : > { %931 = vmatpush.msrb.mxu0 %v469_v0 }
 0x121   : > { %643 = vmatpush.msrb.mxu2 %v2016_v63  ;;  %v468_v63 = vld [vmem:[#allocation8 + $0x80] sm:$0xff] }
 0x122   : > { %932 = vmatpush.msrb.mxu0 %v467_v2 }
 0x123   : > { %644 = vmatpush.msrb.mxu2 %v2002_v58  ;;  %v472_v58 = vld [vmem:[#allocation8 + $0xa0] sm:$0xff] }
 0x124   : > { %864 = vmatpush.msrb.mxu3 %v472_v58  ;;  %933 = vmatpush.msrb.mxu0 %v465_v4  ;;  %v734_v58 = vpop.permute.xlu2 %733 }
 0x125   : > { %645 = vmatpush.msrb.mxu2 %v1983_v52  ;;  %v624_v52 = vld [vmem:[#allocation2 + $0x50] sm:$0xff]  ;;  %v795_v59 = vmul.f32 %v734_v58, %v513_v53 }
 0x126   : > { %646 = vmatmul.f32.vlgmr.msrb.gmra.mxu2 %v614_v28  ;;  %865 = vmatpush.msrb.mxu3 %v470_v60  ;;  %v791_v28 = vmul.f32 %v714_v27, %v501_v23 }
 0x127   : > { %934 = vmatpush.msrb.mxu0 %v463_v7 }
 0x128   : > { %866 = vmatpush.msrb.mxu3 %v468_v63  ;;  %v516_v63 = vpop.f32.mrf.mxu0 }
 0x129   : > { %935 = vmatpush.msrb.mxu0 %v461_v10  ;;  %v744_v10 = vpop.permute.xlu0 %743 }
 0x12a   : > { %867 = vmatpush.msrb.mxu3 %v466_v1 }
 0x12b   : > { %936 = vmatpush.msrb.mxu0 %v459_v12 }
 0x12c   : > { %868 = vmatpush.msrb.mxu3 %v464_v3  ;;  %v739_v2 = vpop.permute.xlu2 %738 }
 0x12d   : > { %937 = vmatpush.msrb.mxu0 %v457_v14  ;;  %v796_v3 = vmul.f32 %v739_v2, %v516_v63 }
 0x12e   : > { %649 = vmatmul.f32.gmra.mxu2 %v615_v30  ;;  %869 = vmatpush.msrb.mxu3 %v462_v6 }
 0x12f   : > { %938 = vmatpush.msrb.mxu0 %v455_v18 }
 0x130   : > { %870 = vmatpush.msrb.mxu3 %v460_v9 }
 0x131   : > { %939 = vmatpush.msrb.mxu0 %v453_v20 }
 0x132   : > { %871 = vmatpush.msrb.mxu3 %v458_v11 }
 0x134   : > { %872 = vmatpush.msrb.mxu3 %v456_v13 }
 0x136   : > { %652 = vmatmul.f32.gmra.mxu2 %v616_v32  ;;  %873 = vmatpush.msrb.mxu3 %v454_v17 }
 0x138   : > { %874 = vmatpush.msrb.mxu3 %v452_v19 }
 0x13e   : > { %655 = vmatmul.f32.gmra.mxu2 %v617_v34 }
 0x146   : > { %658 = vmatmul.f32.gmra.mxu2 %v618_v36  ;;  %v792_v36 = vmul.f32 %v719_v35, %v504_v26 }
 0x14e   : > { %661 = vmatmul.f32.gmra.mxu2 %v619_v38 }
 0x156   : > { %664 = vmatmul.f32.gmra.mxu2 %v620_v39 }
 0x15e   : > { %667 = vmatmul.f32.gmra.mxu2 %v621_v41  ;;  %v724_v41 = vpop.permute.xlu1 %723 }
 0x166   : > { %670 = vmatmul.f32.gmra.mxu2 %v622_v42  ;;  %v793_v42 = vmul.f32 %v724_v41, %v507_v33  ;;  %v729_v51 = vpop.permute.xlu1 %728  ;;  %v759_v33 = vpop.permute.xlu0 %758 }
 0x16e   : > { %673 = vmatmul.f32.gmra.mxu2 %v623_v44  ;;  %v749_v18 = vpop.permute.xlu1 %748 }
 0x176   : > { %676 = vmatmul.f32.gmra.mxu2 %v624_v52  ;;  %v794_v52 = vmul.f32 %v729_v51, %v510_v46 }
 0x17e   : > { %679 = vmatmul.f32.gmra.mxu2 %v625_v62 }
 0x186   : > { %682 = vmatmul.f32.gmra.mxu2 %v626_v8  ;;  %v519_v8 = vpop.f32.mrf.mxu0 }
 0x187   : > { %v797_v11 = vmul.f32 %v744_v10, %v519_v8 }
 0x18e   : > { %685 = vmatmul.f32.gmra.mxu2 %v627_v15  ;;  %v522_v15 = vpop.f32.mrf.mxu0 }
 0x18f   : > { %v798_v19 = vmul.f32 %v749_v18, %v522_v15 }
 0x196   : > { %688 = vmatmul.f32.gmra.mxu2 %v628_v21 }
 0x19e   : > { %691 = vmatmul.f32.gmra.mxu2 %v629_v24  ;;  %v754_v24 = vpop.permute.xlu2 %753 }
 0x19f   : > { %v799_v27 = vmul.f32 %v754_v24, %v2100_v40 }
 0x1a6   : > { %v769_v46 = vpop.permute.xlu2 %768 }
 0x1a9   : > { %v647_v30 = vpop.f32.mrf.mxu2 }
 0x1aa   : > { %v807_v31 = vadd.f32 %v791_v28, %v647_v30 }
 0x1ac   : > { %v827_v32 = vadd.f32 %v2119_v29, %v807_v31 }
 0x1ae   : > { %v843_v34 = vmax.f32 %v827_v32, 0.0 }
 0x1b0   : > { %875 = vmatmul.f32.vlgmr.msrb.gmra.mxu3 %v843_v34  ;;  %940 = vmatmul.f32.vlgmr.msrb.gmra.mxu0 %v843_v34  ;;  %v800_v34 = vmul.f32 %v759_v33, %v2102_v43  ;;  %v802_v43 = vmul.f32 %v769_v46, %v2106_v56  ;;  %v995_v33 = vld [vmem:[#allocation7 + $0x30] sm:$0xff] }
 0x1b1   : > { %v650_v37 = vpop.f32.mrf.mxu2 }
 0x1b2   : > { %v808_v38 = vadd.f32 %v792_v36, %v650_v37 }
 0x1b4   : > { %v828_v39 = vadd.f32 %v2119_v29, %v808_v38  ;;  %v764_v38 = vpop.permute.xlu1 %763 }
 0x1b5   : > { %v801_v40 = vmul.f32 %v764_v38, %v2104_v45  ;;  %v1000_v38 = vld [vmem:[#allocation7 + $0x58] sm:$0xff] }
 0x1b6   : > { %v844_v44 = vmax.f32 %v828_v39, 0.0 }
 0x1b8   : > { %878 = vmatmul.f32.gmra.mxu3 %v844_v44  ;;  %943 = vmatmul.f32.gmra.mxu0 %v844_v44 }
 0x1b9   : > { %v653_v47 = vpop.f32.mrf.mxu2 }
 0x1ba   : > { %v809_v48 = vadd.f32 %v793_v42, %v653_v47 }
 0x1bc   : > { %v829_v49 = vadd.f32 %v2119_v29, %v809_v48  ;;  %v779_v58 = vpop.permute.xlu1 %778 }
 0x1bd   : > { %v804_v56 = vmul.f32 %v779_v58, %v2110_v16  ;;  %v1535_v58 = vld [vmem:[%s1907_s18] sm:$0xff] }
 0x1be   : > { %v845_v50 = vmax.f32 %v829_v49, 0.0 }
 0x1c0   : > { %881 = vmatmul.f32.gmra.mxu3 %v845_v50  ;;  %946 = vmatmul.f32.gmra.mxu0 %v845_v50 }
 0x1c1   : > { %v656_v54 = vpop.f32.mrf.mxu2 }
 0x1c2   : > { %v810_v55 = vadd.f32 %v794_v52, %v656_v54  ;;  %v774_v52 = vpop.permute.xlu0 %773 }
 0x1c3   : > { %v803_v45 = vmul.f32 %v774_v52, %v2108_v5 }
 0x1c4   : > { %v830_v57 = vadd.f32 %v2119_v29, %v810_v55 }
 0x1c6   : > { %v846_v60 = vmax.f32 %v830_v57, 0.0 }
 0x1c8   : > { %884 = vmatmul.f32.gmra.mxu3 %v846_v60  ;;  %949 = vmatmul.f32.gmra.mxu0 %v846_v60 }
 0x1c9   : > { %v659_v61 = vpop.f32.mrf.mxu2 }
 0x1ca   : > { %v811_v62 = vadd.f32 %v795_v59, %v659_v61 }
 0x1cc   : > { %v831_v0 = vadd.f32 %v2119_v29, %v811_v62  ;;  %v784_v62 = vpop.permute.xlu2 %783 }
 0x1cd   : > { %v805_v5 = vmul.f32 %v784_v62, %v2112_v22 }
 0x1ce   : > { %v847_v1 = vmax.f32 %v831_v0, 0.0 }
 0x1d0   : > { %887 = vmatmul.f32.gmra.mxu3 %v847_v1  ;;  %952 = vmatmul.f32.gmra.mxu0 %v847_v1 }
 0x1d1   : > { %v662_v4 = vpop.f32.mrf.mxu2 }
 0x1d2   : > { %v812_v6 = vadd.f32 %v796_v3, %v662_v4  ;;  %v789_v4 = vpop.permute.xlu0 %788 }
 0x1d3   : > { %v806_v16 = vmul.f32 %v789_v4, %v2114_v25 }
 0x1d4   : > { %v832_v7 = vadd.f32 %v2119_v29, %v812_v6 }
 0x1d6   : > { %v848_v9 = vmax.f32 %v832_v7, 0.0 }
 0x1d8   : > { %890 = vmatmul.f32.gmra.mxu3 %v848_v9  ;;  %955 = vmatmul.f32.gmra.mxu0 %v848_v9 }
 0x1d9   : > { %v665_v12 = vpop.f32.mrf.mxu2 }
 0x1da   : > { %v813_v13 = vadd.f32 %v797_v11, %v665_v12 }
 0x1dc   : > { %v833_v14 = vadd.f32 %v2119_v29, %v813_v13 }
 0x1de   : > { %v849_v17 = vmax.f32 %v833_v14, 0.0 }
 0x1e0   : > { %893 = vmatmul.f32.gmra.mxu3 %v849_v17  ;;  %958 = vmatmul.f32.gmra.mxu0 %v849_v17 }
 0x1e1   : > { %v668_v20 = vpop.f32.mrf.mxu2 }
 0x1e2   : > { %v814_v21 = vadd.f32 %v798_v19, %v668_v20 }
 0x1e4   : > { %v834_v23 = vadd.f32 %v2119_v29, %v814_v21 }
 0x1e6   : > { %v850_v26 = vmax.f32 %v834_v23, 0.0 }
 0x1e8   : > { %896 = vmatmul.f32.gmra.mxu3 %v850_v26  ;;  %961 = vmatmul.f32.gmra.mxu0 %v850_v26 }
 0x1e9   : > { %v671_v28 = vpop.f32.mrf.mxu2 }
 0x1ea   : > { %v815_v30 = vadd.f32 %v799_v27, %v671_v28  ;;  %v990_v27 = vld [vmem:[#allocation7 + $0x8] sm:$0xff]  ;;  %v991_v28 = vld [vmem:[#allocation7 + $0x10] sm:$0xff] }
 0x1ec   : > { %v835_v31 = vadd.f32 %v2119_v29, %v815_v30  ;;  %v992_v30 = vld [vmem:[#allocation7 + $0x18] sm:$0xff] }
 0x1ee   : > { %v851_v32 = vmax.f32 %v835_v31, 0.0  ;;  %v993_v31 = vld [vmem:[#allocation7 + $0x20] sm:$0xff] }
 0x1f0   : > { %899 = vmatmul.f32.gmra.mxu3 %v851_v32  ;;  %964 = vmatmul.f32.gmra.mxu0 %v851_v32  ;;  %v994_v32 = vld [vmem:[#allocation7 + $0x28] sm:$0xff] }
 0x1f1   : > { %v674_v35 = vpop.f32.mrf.mxu2 }
 0x1f2   : > { %v816_v36 = vadd.f32 %v800_v34, %v674_v35  ;;  %v996_v34 = vld [vmem:[#allocation7 + $0x38] sm:$0xff]  ;;  %v997_v35 = vld [vmem:[#allocation7 + $0x40] sm:$0xff] }
 0x1f4   : > { %v836_v37 = vadd.f32 %v2119_v29, %v816_v36  ;;  %v998_v36 = vld [vmem:[#allocation7 + $0x48] sm:$0xff] }
 0x1f6   : > { %v852_v39 = vmax.f32 %v836_v37, 0.0  ;;  %v999_v37 = vld [vmem:[#allocation7 + $0x50] sm:$0xff] }
 0x1f8   : > { %902 = vmatmul.f32.gmra.mxu3 %v852_v39  ;;  %967 = vmatmul.f32.gmra.mxu0 %v852_v39 }
 0x1f9   : > { %v677_v41 = vpop.f32.mrf.mxu2 }
 0x1fa   : > { %v817_v42 = vadd.f32 %v801_v40, %v677_v41  ;;  %v1001_v40 = vld [vmem:[#allocation7 + $0x60] sm:$0xff] }
 0x1fc   : > { %v837_v44 = vadd.f32 %v2119_v29, %v817_v42  ;;  %v1002_v42 = vld [vmem:[#allocation7 + $0x68] sm:$0xff] }
 0x1fe   : > { %v853_v47 = vmax.f32 %v837_v44, 0.0  ;;  %v1003_v44 = vld [vmem:[#allocation7 + $0x70] sm:$0xff] }
 0x200   : > { %905 = vmatmul.f32.gmra.mxu3 %v853_v47  ;;  %970 = vmatmul.f32.gmra.mxu0 %v853_v47  ;;  %v1004_v47 = vld [vmem:[#allocation7 + $0x78] sm:$0xff] }
 0x201   : > { %v680_v48 = vpop.f32.mrf.mxu2 }
 0x202   : > { %v818_v49 = vadd.f32 %v802_v43, %v680_v48  ;;  %v1089_v48 = vpop.permute.xlu1 %1088 }
 0x204   : > { %v838_v50 = vadd.f32 %v2119_v29, %v818_v49 }
 0x206   : > { %v854_v51 = vmax.f32 %v838_v50, 0.0  ;;  %v2148_v50 = vld [vmem:[%s2245_s8] ss:$0 sm:$0xff] }
 0x208   : > { %908 = vmatmul.f32.gmra.mxu3 %v854_v51  ;;  %973 = vmatmul.f32.gmra.mxu0 %v854_v51 }
 0x209   : > { %v683_v53 = vpop.f32.mrf.mxu2 }
 0x20a   : > { %v819_v54 = vadd.f32 %v803_v45, %v683_v53 }
 0x20c   : > { %v839_v55 = vadd.f32 %v2119_v29, %v819_v54  ;;  %v1094_v54 = vpop.permute.xlu2 %1093 }
 0x20e   : > { %v855_v57 = vmax.f32 %v839_v55, 0.0 }
 0x210   : > { %911 = vmatmul.f32.gmra.mxu3 %v855_v57  ;;  %976 = vmatmul.f32.gmra.mxu0 %v855_v57 }
 0x211   : > { %v686_v59 = vpop.f32.mrf.mxu2 }
 0x212   : > { %v820_v60 = vadd.f32 %v804_v56, %v686_v59 }
 0x214   : > { %v840_v61 = vadd.f32 %v2119_v29, %v820_v60 }
 0x216   : > { %v856_v63 = vmax.f32 %v840_v61, 0.0 }
 0x218   : > { %914 = vmatmul.f32.gmra.mxu3 %v856_v63  ;;  %979 = vmatmul.f32.gmra.mxu0 %v856_v63  ;;  %v1099_v63 = vpop.permute.xlu0 %1098 }
 0x219   : > { %v689_v0 = vpop.f32.mrf.mxu2 }
 0x21a   : > { %v821_v1 = vadd.f32 %v805_v5, %v689_v0  ;;  %v1536_v0 = vld [vmem:[%s1907_s18 + $0x8] sm:$0xff] }
 0x21c   : > { %v841_v2 = vadd.f32 %v2119_v29, %v821_v1 }
 0x21e   : > { %v857_v3 = vmax.f32 %v841_v2, 0.0 }
 0x220   : > { %917 = vmatmul.f32.gmra.mxu3 %v857_v3  ;;  %982 = vmatmul.f32.gmra.mxu0 %v857_v3 }
 0x221   : > { %v692_v6 = vpop.f32.mrf.mxu2 }
 0x222   : > { %v822_v7 = vadd.f32 %v806_v16, %v692_v6 }
 0x224   : > { %v842_v8 = vadd.f32 %v2119_v29, %v822_v7  ;;  %v989_v29 = vld [vmem:[#allocation7] sm:$0xff]  ;;  %v1104_v7 = vpop.permute.xlu1 %1103 }
 0x226   : > { %v858_v9 = vmax.f32 %v842_v8, 0.0 }
 0x228   : > { %920 = vmatmul.f32.gmra.mxu3 %v858_v9  ;;  %985 = vmatmul.f32.gmra.mxu0 %v858_v9  ;;  %v1537_v9 = vld [vmem:[%s1907_s18 + $0x10] sm:$0xff] }
 0x22d   : > { %v941_v22 = vpop.f32.mrf.mxu0 }
 0x233   : > { %v876_v39 = vpop.f32.mrf.mxu3 }
 0x234   : > { %v1166_v49 = vmul.f32 %v1089_v48, %v876_v39 }
 0x235   : > { %v944_v10 = vpop.f32.mrf.mxu0 }
 0x23b   : > { %v879_v41 = vpop.f32.mrf.mxu3 }
 0x23c   : > { %v1167_v57 = vmul.f32 %v1094_v54, %v879_v41 }
 0x23d   : > { %v947_v11 = vpop.f32.mrf.mxu0 }
 0x243   : > { %v882_v46 = vpop.f32.mrf.mxu3 }
 0x244   : > { %v1168_v5 = vmul.f32 %v1099_v63, %v882_v46 }
 0x245   : > { %v950_v12 = vpop.f32.mrf.mxu0 }
 0x24b   : > { %v885_v43 = vpop.f32.mrf.mxu3 }
 0x24c   : > { %v1169_v8 = vmul.f32 %v1104_v7, %v885_v43 }
 0x24d   : > { %v953_v13 = vpop.f32.mrf.mxu0 }
 0x253   : > { %v888_v55 = vpop.f32.mrf.mxu3 }
 0x255   : > { %v956_v14 = vpop.f32.mrf.mxu0 }
 0x25b   : > { %v891_v2 = vpop.f32.mrf.mxu3 }
 0x25d   : > { %v959_v15 = vpop.f32.mrf.mxu0 }
 0x265   : > { %v962_v17 = vpop.f32.mrf.mxu0 }
 0x26d   : > { %v965_v18 = vpop.f32.mrf.mxu0 }
 0x275   : > { %v968_v19 = vpop.f32.mrf.mxu0 }
 0x27d   : > { %v971_v25 = vpop.f32.mrf.mxu0 }
 0x285   : > { %v974_v20 = vpop.f32.mrf.mxu0 }
 0x28d   : > { %v977_v21 = vpop.f32.mrf.mxu0 }
 0x295   : > { %v980_v23 = vpop.f32.mrf.mxu0 }
 0x29d   : > { %v983_v24 = vpop.f32.mrf.mxu0 }
 0x2a5   : > { %v986_v26 = vpop.f32.mrf.mxu0 }
 0x2a6   : > { %1005 = vmatpush.msrb.mxu1 %v986_v26  ;;  %v1114_v26 = vpop.permute.xlu0 %1113 }
 0x2a8   : > { %1006 = vmatpush.msrb.mxu1 %v983_v24 }
 0x2aa   : > { %1007 = vmatpush.msrb.mxu1 %v980_v23 }
 0x2ac   : > { %1008 = vmatpush.msrb.mxu1 %v977_v21 }
 0x2ae   : > { %1009 = vmatpush.msrb.mxu1 %v974_v20 }
 0x2b0   : > { %1010 = vmatpush.msrb.mxu1 %v971_v25 }
 0x2b2   : > { %1011 = vmatpush.msrb.mxu1 %v968_v19 }
 0x2b4   : > { %1012 = vmatpush.msrb.mxu1 %v965_v18  ;;  %v1538_v18 = vld [vmem:[%s1907_s18 + $0x18] sm:$0xff] }
 0x2b6   : > { %1013 = vmatpush.msrb.mxu1 %v962_v17 }
 0x2b8   : > { %1014 = vmatpush.msrb.mxu1 %v959_v15  ;;  %v1109_v15 = vpop.permute.xlu2 %1108 }
 0x2b9   : > { %v1170_v17 = vmul.f32 %v1109_v15, %v888_v55  ;;  %v1542_v55 = vld [vmem:[%s1907_s18 + $0x38] sm:$0xff] }
 0x2ba   : > { %1015 = vmatpush.msrb.mxu1 %v956_v14 }
 0x2bc   : > { %1016 = vmatpush.msrb.mxu1 %v953_v13 }
 0x2be   : > { %1017 = vmatpush.msrb.mxu1 %v950_v12  ;;  %v894_v12 = vpop.f32.mrf.mxu3 }
 0x2c0   : > { %1018 = vmatpush.msrb.mxu1 %v947_v11 }
 0x2c2   : > { %1019 = vmatpush.msrb.mxu1 %v944_v10 }
 0x2c4   : > { %1020 = vmatpush.msrb.mxu1 %v941_v22 }
 0x2c5   : > { %1021 = vmatmul.f32.vlgmr.msrb.gmra.mxu1 %v989_v29  ;;  %v1171_v29 = vmul.f32 %v1114_v26, %v891_v2  ;;  %v1546_v26 = vld [vmem:[%s1907_s18 + $0x58] sm:$0xff] }
 0x2c6   : > { %v897_v23 = vpop.f32.mrf.mxu3 }
 0x2cd   : > { %1024 = vmatmul.f32.gmra.mxu1 %v990_v27  ;;  %v1539_v27 = vld [vmem:[%s1907_s18 + $0x20] sm:$0xff] }
 0x2d5   : > { %1027 = vmatmul.f32.gmra.mxu1 %v991_v28 }
 0x2dd   : > { %1030 = vmatmul.f32.gmra.mxu1 %v992_v30 }
 0x2e5   : > { %1033 = vmatmul.f32.gmra.mxu1 %v993_v31 }
 0x2ed   : > { %1036 = vmatmul.f32.gmra.mxu1 %v994_v32 }
 0x2f5   : > { %1039 = vmatmul.f32.gmra.mxu1 %v995_v33 }
 0x2fd   : > { %1042 = vmatmul.f32.gmra.mxu1 %v996_v34  ;;  %v1119_v34 = vpop.permute.xlu1 %1118 }
 0x305   : > { %1045 = vmatmul.f32.gmra.mxu1 %v997_v35  ;;  %v900_v35 = vpop.f32.mrf.mxu3 }
 0x30d   : > { %1048 = vmatmul.f32.gmra.mxu1 %v998_v36  ;;  %v1172_v36 = vmul.f32 %v1119_v34, %v894_v12  ;;  %v903_v48 = vpop.f32.mrf.mxu3 }
 0x315   : > { %1051 = vmatmul.f32.gmra.mxu1 %v999_v37  ;;  %v1540_v37 = vld [vmem:[%s1907_s18 + $0x28] sm:$0xff] }
 0x31d   : > { %1054 = vmatmul.f32.gmra.mxu1 %v1000_v38 }
 0x325   : > { %1057 = vmatmul.f32.gmra.mxu1 %v1001_v40 }
 0x32d   : > { %1060 = vmatmul.f32.gmra.mxu1 %v1002_v42 }
 0x335   : > { %1063 = vmatmul.f32.gmra.mxu1 %v1003_v44  ;;  %v1124_v44 = vpop.permute.xlu2 %1123 }
 0x336   : > { %v1173_v46 = vmul.f32 %v1124_v44, %v897_v23 }
 0x33d   : > { %1066 = vmatmul.f32.gmra.mxu1 %v1004_v47  ;;  %v1541_v47 = vld [vmem:[%s1907_s18 + $0x30] sm:$0xff] }
 0x342   : > { %v1022_v51 = vpop.f32.mrf.mxu1 }
 0x343   : > { %v1182_v52 = vadd.f32 %v1166_v49, %v1022_v51 }
 0x345   : > { %v1202_v45 = vadd.f32 %v2148_v50, %v1182_v52 }
 0x347   : > { %v1218_v53 = vmax.f32 %v1202_v45, 0.0 }
 0x349   : > { %v1234_v56 = vadd.f32 %v1535_v58, %v1218_v53  ;;  %v1129_v53 = vpop.permute.xlu0 %1128 }
 0x34a   : > { %v1025_v59 = vpop.f32.mrf.mxu1  ;;  %v1174_v54 = vmul.f32 %v1129_v53, %v900_v35  ;;  %v1547_v35 = vld [vmem:[%s1907_s18 + $0x60] sm:$0xff] }
 0x34b   : > { %1250 = vst [vmem:[%s2155_s27] sm:$0xff] %v1234_v56  ;;  %v1183_v60 = vadd.f32 %v1167_v57, %v1025_v59  ;;  %v906_v59 = vpop.f32.mrf.mxu3 }
 0x34d   : > { %v1203_v61 = vadd.f32 %v2148_v50, %v1183_v60 }
 0x34f   : > { %v1219_v62 = vmax.f32 %v1203_v61, 0.0 }
 0x351   : > { %v1235_v1 = vadd.f32 %v1536_v0, %v1219_v62  ;;  %v1134_v62 = vpop.permute.xlu1 %1133 }
 0x352   : > { %v1028_v3 = vpop.f32.mrf.mxu1  ;;  %v1175_v63 = vmul.f32 %v1134_v62, %v903_v48 }
 0x353   : > { %1251 = vst [vmem:[%s2155_s27 + $0x8] sm:$0xff] %v1235_v1  ;;  %v1184_v4 = vadd.f32 %v1168_v5, %v1028_v3  ;;  %v1543_v5 = vld [vmem:[%s1907_s18 + $0x40] sm:$0xff] }
 0x355   : > { %v1204_v16 = vadd.f32 %v2148_v50, %v1184_v4  ;;  %v909_v4 = vpop.f32.mrf.mxu3 }
 0x357   : > { %v1220_v6 = vmax.f32 %v1204_v16, 0.0 }
 0x359   : > { %v1236_v22 = vadd.f32 %v1537_v9, %v1220_v6  ;;  %v1139_v6 = vpop.permute.xlu2 %1138  ;;  %v1149_v23 = vpop.permute.xlu1 %1148 }
 0x35a   : > { %v1031_v10 = vpop.f32.mrf.mxu1  ;;  %v1176_v7 = vmul.f32 %v1139_v6, %v906_v59 }
 0x35b   : > { %1252 = vst [vmem:[%s2155_s27 + $0x10] sm:$0xff] %v1236_v22  ;;  %v1185_v11 = vadd.f32 %v1169_v8, %v1031_v10  ;;  %v1544_v8 = vld [vmem:[%s1907_s18 + $0x48] sm:$0xff] }
 0x35d   : > { %v1205_v13 = vadd.f32 %v2148_v50, %v1185_v11 }
 0x35f   : > { %v1221_v14 = vmax.f32 %v1205_v13, 0.0  ;;  %v1144_v13 = vpop.permute.xlu0 %1143 }
 0x360   : > { %v1177_v15 = vmul.f32 %v1144_v13, %v909_v4 }
 0x361   : > { %v1237_v19 = vadd.f32 %v1538_v18, %v1221_v14  ;;  %v912_v14 = vpop.f32.mrf.mxu3 }
 0x362   : > { %v1034_v25 = vpop.f32.mrf.mxu1 }
 0x363   : > { %1253 = vst [vmem:[%s2155_s27 + $0x18] sm:$0xff] %v1237_v19  ;;  %v1186_v20 = vadd.f32 %v1170_v17, %v1034_v25  ;;  %v1545_v17 = vld [vmem:[%s1907_s18 + $0x50] sm:$0xff] }
 0x365   : > { %v1206_v21 = vadd.f32 %v2148_v50, %v1186_v20 }
 0x367   : > { %v1222_v24 = vmax.f32 %v1206_v21, 0.0 }
 0x369   : > { %v1238_v28 = vadd.f32 %v1539_v27, %v1222_v24  ;;  %v1178_v24 = vmul.f32 %v1149_v23, %v912_v14  ;;  %v915_v27 = vpop.f32.mrf.mxu3 }
 0x36a   : > { %v1037_v30 = vpop.f32.mrf.mxu1 }
 0x36b   : > { %1254 = vst [vmem:[%s2155_s27 + $0x20] sm:$0xff] %v1238_v28  ;;  %v1187_v31 = vadd.f32 %v1171_v29, %v1037_v30 }
 0x36d   : > { %v1207_v32 = vadd.f32 %v2148_v50, %v1187_v31 }
 0x36f   : > { %v1223_v33 = vmax.f32 %v1207_v32, 0.0 }
 0x371   : > { %v1239_v38 = vadd.f32 %v1540_v37, %v1223_v33  ;;  %v1154_v33 = vpop.permute.xlu2 %1153 }
 0x372   : > { %v1040_v39 = vpop.f32.mrf.mxu1  ;;  %v1179_v34 = vmul.f32 %v1154_v33, %v915_v27 }
 0x373   : > { %1255 = vst [vmem:[%s2155_s27 + $0x28] sm:$0xff] %v1239_v38  ;;  %v1188_v40 = vadd.f32 %v1172_v36, %v1040_v39  ;;  %v918_v39 = vpop.f32.mrf.mxu3 }
 0x375   : > { %v1208_v41 = vadd.f32 %v2148_v50, %v1188_v40 }
 0x377   : > { %v1224_v42 = vmax.f32 %v1208_v41, 0.0 }
 0x379   : > { %v1240_v43 = vadd.f32 %v1541_v47, %v1224_v42  ;;  %v1159_v42 = vpop.permute.xlu0 %1158 }
 0x37a   : > { %v1043_v49 = vpop.f32.mrf.mxu1  ;;  %v1180_v44 = vmul.f32 %v1159_v42, %v918_v39 }
 0x37b   : > { %1256 = vst [vmem:[%s2155_s27 + $0x30] sm:$0xff] %v1240_v43  ;;  %v1189_v51 = vadd.f32 %v1173_v46, %v1043_v49  ;;  %v1548_v46 = vld [vmem:[%s1907_s18 + $0x68] sm:$0xff] }
 0x37d   : > { %v1209_v52 = vadd.f32 %v2148_v50, %v1189_v51  ;;  %v921_v51 = vpop.f32.mrf.mxu3 }
 0x37f   : > { %v1225_v45 = vmax.f32 %v1209_v52, 0.0 }
 0x381   : > { %v1241_v57 = vadd.f32 %v1542_v55, %v1225_v45  ;;  %v1164_v45 = vpop.permute.xlu1 %1163 }
 0x382   : > { %v1046_v58 = vpop.f32.mrf.mxu1  ;;  %v1181_v53 = vmul.f32 %v1164_v45, %v921_v51 }
 0x383   : > { %1257 = vst [vmem:[%s2155_s27 + $0x38] sm:$0xff] %v1241_v57  ;;  %v1190_v56 = vadd.f32 %v1174_v54, %v1046_v58  ;;  %v1549_v54 = vld [vmem:[%s1907_s18 + $0x70] sm:$0xff] }
 0x385   : > { %v1210_v60 = vadd.f32 %v2148_v50, %v1190_v56 }
 0x387   : > { %v1226_v61 = vmax.f32 %v1210_v60, 0.0  ;;  %v1550_v60 = vld [vmem:[%s1907_s18 + $0x78] sm:$0xff] }
 0x389   : > { %v1242_v0 = vadd.f32 %v1543_v5, %v1226_v61 }
 0x38a   : > { %v1049_v1 = vpop.f32.mrf.mxu1 }
 0x38b   : > { %1258 = vst [vmem:[%s2155_s27 + $0x40] sm:$0xff] %v1242_v0  ;;  %v1191_v2 = vadd.f32 %v1175_v63, %v1049_v1 }
 0x38d   : > { %v1211_v3 = vadd.f32 %v2148_v50, %v1191_v2 }
 0x38f   : > { %v1227_v16 = vmax.f32 %v1211_v3, 0.0 }
 0x391   : > { %v1243_v9 = vadd.f32 %v1544_v8, %v1227_v16 }
 0x392   : > { %v1052_v22 = vpop.f32.mrf.mxu1 }
 0x393   : > { %1259 = vst [vmem:[%s2155_s27 + $0x48] sm:$0xff] %v1243_v9  ;;  %v1192_v10 = vadd.f32 %v1176_v7, %v1052_v22 }
 0x395   : > { %v1212_v11 = vadd.f32 %v2148_v50, %v1192_v10 }
 0x397   : > { %v1228_v12 = vmax.f32 %v1212_v11, 0.0 }
 0x399   : > { %v1244_v18 = vadd.f32 %v1545_v17, %v1228_v12 }
 0x39a   : > { %v1055_v19 = vpop.f32.mrf.mxu1 }
 0x39b   : > { %1260 = vst [vmem:[%s2155_s27 + $0x50] sm:$0xff] %v1244_v18  ;;  %v1193_v25 = vadd.f32 %v1177_v15, %v1055_v19 }
 0x39d   : > { %v1213_v20 = vadd.f32 %v2148_v50, %v1193_v25 }
 0x39f   : > { %v1229_v21 = vmax.f32 %v1213_v20, 0.0 }
 0x3a1   : > { %v1245_v29 = vadd.f32 %v1546_v26, %v1229_v21 }
 0x3a2   : > { %v1058_v28 = vpop.f32.mrf.mxu1 }
 0x3a3   : > { %1261 = vst [vmem:[%s2155_s27 + $0x58] sm:$0xff] %v1245_v29  ;;  %v1194_v30 = vadd.f32 %v1178_v24, %v1058_v28 }
 0x3a5   : > { %v1214_v31 = vadd.f32 %v2148_v50, %v1194_v30 }
 0x3a7   : > { %v1230_v32 = vmax.f32 %v1214_v31, 0.0 }
 0x3a9   : > { %v1246_v36 = vadd.f32 %v1547_v35, %v1230_v32 }
 0x3aa   : > { %v1061_v37 = vpop.f32.mrf.mxu1 }
 0x3ab   : > { %1262 = vst [vmem:[%s2155_s27 + $0x60] sm:$0xff] %v1246_v36  ;;  %v1195_v38 = vadd.f32 %v1179_v34, %v1061_v37 }
 0x3ad   : > { %v1215_v40 = vadd.f32 %v2148_v50, %v1195_v38 }
 0x3af   : > { %v1231_v41 = vmax.f32 %v1215_v40, 0.0 }
 0x3b1   : > { %v1247_v47 = vadd.f32 %v1548_v46, %v1231_v41 }
 0x3b2   : > { %v1064_v43 = vpop.f32.mrf.mxu1 }
 0x3b3   : > { %1263 = vst [vmem:[%s2155_s27 + $0x68] sm:$0xff] %v1247_v47  ;;  %v1196_v48 = vadd.f32 %v1180_v44, %v1064_v43 }
 0x3b5   : > { %v1216_v49 = vadd.f32 %v2148_v50, %v1196_v48 }
 0x3b7   : > { %v1232_v52 = vmax.f32 %v1216_v49, 0.0 }
 0x3b9   : > { %v1248_v55 = vadd.f32 %v1549_v54, %v1232_v52 }
 0x3ba   : > { %v1067_v57 = vpop.f32.mrf.mxu1 }
 0x3bb   : > { %1264 = vst [vmem:[%s2155_s27 + $0x70] sm:$0xff] %v1248_v55  ;;  %v1197_v58 = vadd.f32 %v1181_v53, %v1067_v57 }
 0x3bd   : > { %v1217_v56 = vadd.f32 %v2148_v50, %v1197_v58 }
 0x3bf   : > { %v1233_v59 = vmax.f32 %v1217_v56, 0.0 }
 0x3c1   : > { %v1249_v61 = vadd.f32 %v1550_v60, %v1233_v59 }
 0x3c3   : > { %1265 = vst [vmem:[%s2155_s27 + $0x78] sm:$0xff] %v1249_v61 }
 0x3c4   : > { %1698 = shalt.err (!%p1695_p8)
}
 0x3c5   : > { %s1756_s18 = smov 128   ;;  %s1757_s15 = smov 8  }
 0x3c6   : > { %1459 = dma.vmem_to_hbm [thread:$0]  (%p1846_p5), %s1281_s25, 2048, %s1283_s28, %s1267_s13, %s1756_s18, %s1756_s18, %s1757_s15  }
 0x3c7 PF: > { %p1486_p9 = scmp.ge.s32.totalorder %s1745_s12, 2  ;;  %s1297_s21 = sand.u32 1, %s1733_s30  }
 0x3c8   : > { %s1298_s27 = scalar_lea.sflag [#allocation4], %s1297_s21 }
 0x3c9   : > { %p1475_p10 = pnand %p1486_p9, %p1850_p6 }
 0x3cb   : > { %p1476_p11 = pneg %p1475_p10 }
 0x3cd   : > { %1728 = dma.done.wait (%p1476_p11), %s1298_s27, 2048  }
 0x3ce   : > { %1730 = vsyncadd (%p1476_p11), %s1298_s27, 4294965248  ;;  %s2264_s12 = sld [smem:[#allocation16_spill]]  ;;  %s2267_s30 = smov %s1737_s10 }
 0x3cf   : > { %s2265_s14 = sld [smem:[#allocation15_spill]] }
 0x3d0   : > { %s2266_s11 = sld [smem:[#allocation17_spill]] }
 0x3d4   : > { %p22_p12 = scmp.ge.s32.totalorder %s2264_s12, 4  }
 0x3d5   : > { %s2268_s10 = smov %s2265_s14 }
 0x3d6   :  { %24 = sbr.rel (!%p22_p12) target bundleno = 9 (0x9), region = 108 }
 0x3db   :  { %1304 = vsyncpa [#allocation3], 1 }
 0x3dc   :  { %1306 = vsyncpa [#allocation3 + $0x1], 1 }
 0x3dd   :  { %1307 = vsyncpa [#allocation6], 1 }
 0x3de   :  { %1308 = vsyncpa [#allocation9], 1 }
 0x3df   :  { %1309 = vsyncpa [#allocation4], 1 }
 0x3e0   :  { %1311 = vsyncpa [#allocation4 + $0x1], 1 }

</bundles_post_ra>
